<compile_context>
chip_gen: v5e
topology: v5e:2x2
jax: 0.10.0
libtpu: 0.0.40
codegen_flags: <defaults>
</compile_context>

<pallas_src>
import jax
import jax.numpy as jnp
from jax.experimental import pallas as pl
from jax.experimental.pallas import tpu as pltpu


TILE_N = 2048      # points per grid step (multiple of ROW_BLOCK)
ROW_BLOCK = 128    # conv3 fused-max row chunk (128*256 f32 = 32 vregs live)
COL_BLOCK = 256    # conv3 fused-max column chunk (full MXU width on v6e/v7x)


# ----------------------------------------------------------------------------
# Kernel: per-point MLP (conv1/2/3 + folded BN + ReLU) with the global
#         max-pool fused into conv3.  Grid = (batch, point_split, point_tiles).
# ----------------------------------------------------------------------------
def point_feat_kernel(x_ref, w1_ref, b1_ref, w2_ref, b2_ref, w3_ref,
                      out_ref, acc_ref):
    t = pl.program_id(2)

    @pl.when(t == 0)
    def _init():
        acc_ref[...] = jnp.full_like(acc_ref, -jnp.inf)

    tile_n = x_ref.shape[1]

    # conv1 + conv2 over the whole tile (bf16 MXU inputs, f32 accumulation).
    # conv1 has K=C=3 on the MXU; <1% of FLOPs, deliberately not "fixed".
    x = x_ref[0]                                                  # (tile_n, C) bf16
    h1 = jnp.dot(x, w1_ref[...], preferred_element_type=jnp.float32)
    h1 = jnp.maximum(h1 + b1_ref[...], 0.0).astype(jnp.bfloat16)  # (tile_n, 64)
    h2 = jnp.dot(h1, w2_ref[...], preferred_element_type=jnp.float32)
    h2 = jnp.maximum(h2 + b2_ref[...], 0.0).astype(jnp.bfloat16)  # (tile_n, 128)

    # conv3 with the max-pool fused in: each (ROW_BLOCK, COL_BLOCK) f32 output
    # chunk stays in vregs, is folded to 8 sublane rows with sublane-aligned
    # vmax (pure VPU), and merged into the running-max accumulator.  The
    # (tile_n, 1024) f32 intermediate never hits VMEM.
    n_row_blocks = tile_n // ROW_BLOCK
    n_col_blocks = w3_ref.shape[1] // COL_BLOCK
    for cb in range(n_col_blocks):
        c0 = cb * COL_BLOCK
        w3_col = w3_ref[:, c0:c0 + COL_BLOCK]                     # (128, COL_BLOCK) bf16
        acc_col = acc_ref[:, c0:c0 + COL_BLOCK]                   # (8, COL_BLOCK) f32
        for rb in range(n_row_blocks):
            r0 = rb * ROW_BLOCK
            chunk = jnp.dot(h2[r0:r0 + ROW_BLOCK, :], w3_col,
                            preferred_element_type=jnp.float32)   # (ROW_BLOCK, COL_BLOCK)
            folded = jnp.max(chunk.reshape(ROW_BLOCK // 8, 8, COL_BLOCK), axis=0)
            acc_col = jnp.maximum(acc_col, folded)
        acc_ref[:, c0:c0 + COL_BLOCK] = acc_col

    @pl.when(t == pl.num_programs(2) - 1)
    def _finalize():
        # Single 8 -> 1 cross-sublane reduce per (batch, split).  conv3 bias +
        # ReLU + cross-split max are applied in the wrapper (exact transform).
        out_ref[...] = jnp.max(acc_ref[...], axis=0, keepdims=True).reshape(
            1, 1, acc_ref.shape[1])


# ----------------------------------------------------------------------------
# Glue
# ----------------------------------------------------------------------------
def _fold_bn(w, b, gamma, beta, mean, var, eps=1e-5):
    """Fold inference-mode BatchNorm into a preceding (in, out) matmul."""
    scale = gamma / jnp.sqrt(var + eps)
    return w * scale[None, :], ((b - mean) * scale + beta)[None, :]


def _round_up(a, m):
    return ((a + m - 1) // m) * m


def _mm_bf16(a, w):
    return jnp.dot(a.astype(jnp.bfloat16), w, preferred_element_type=jnp.float32)


def stn3d_forward(x_bcn, params, *, tile_n_max=TILE_N):
    """x_bcn: (B, C, N) float32 (PyTorch Conv1d layout).  Returns (B, 3, 3)."""
    B, C, N = x_bcn.shape

    # channels-last; Conv1d(kernel=1) == per-point matmul.  bf16 once in HBM.
    # TODO(synk): for very large N (>100k points) consume x in its native
    #             (B, C, N) layout with an in-kernel remainder mask to skip this
    #             HBM transpose/pad pass; negligible for typical point counts.
    x = jnp.transpose(x_bcn, (0, 2, 1)).astype(jnp.bfloat16)      # (B, N, C)

    # Fold BN1..BN5 (running-stats form) into the adjacent matmuls.
    w1, b1 = _fold_bn(params["w1"], params["b1"], *params["bn1"])
    w2, b2 = _fold_bn(params["w2"], params["b2"], *params["bn2"])
    w3, b3 = _fold_bn(params["w3"], params["b3"], *params["bn3"])
    w4, b4 = _fold_bn(params["w4"], params["b4"], *params["bn4"])
    w5, b5 = _fold_bn(params["w5"], params["b5"], *params["bn5"])
    # Fold the 3x3 identity into fc3's bias.
    b6 = params["b6"][None, :] + jnp.eye(3, dtype=jnp.float32).reshape(1, 9)

    # bf16 weights for the MXU (f32 accumulate inside); biases stay f32.
    w1, w2, w3 = (w.astype(jnp.bfloat16) for w in (w1, w2, w3))
    w4, w5 = w4.astype(jnp.bfloat16), w5.astype(jnp.bfloat16)
    w6 = params["w6"].astype(jnp.bfloat16)

    # --- tile the points axis; pad to a multiple of ROW_BLOCK by replicating
    #     point 0 (duplicates cannot change the max) --------------------------
    tile_n_max = max(ROW_BLOCK, _round_up(tile_n_max, ROW_BLOCK))
    n_pad = max(ROW_BLOCK, _round_up(N, ROW_BLOCK))
    tile_n = min(n_pad, tile_n_max)
    n_tiles = pl.cdiv(n_pad, tile_n)
    n_pad = n_tiles * tile_n
    if n_pad != N:
        pad = jnp.broadcast_to(x[:, :1, :], (B, n_pad - N, C))
        x = jnp.concatenate([x, pad], axis=1)

    # Extra parallel split over points so small-batch inference can still fill
    # both v7x TensorCores; harmless (single TC) on v5e/v6e.
    n_split = 2 if (n_tiles >= 2 and n_tiles % 2 == 0) else 1
    tiles_per_split = n_tiles // n_split

    full = lambda shape: pl.BlockSpec(shape, lambda b, s, t: (0,) * len(shape))

    flops = 2 * B * n_pad * (C * 64 + 64 * 128 + 128 * 1024)
    bytes_accessed = int(x.size * 2 + (w1.size + w2.size + w3.size) * 2
                         + (b1.size + b2.size) * 4 + B * n_split * 1024 * 4)

    partial_max = pl.pallas_call(
        point_feat_kernel,
        out_shape=jax.ShapeDtypeStruct((B, n_split, 1024), jnp.float32),
        grid_spec=pltpu.PrefetchScalarGridSpec(
            num_scalar_prefetch=0,
            grid=(B, n_split, tiles_per_split),
            in_specs=[
                pl.BlockSpec((1, tile_n, C),
                             lambda b, s, t: (b, s * tiles_per_split + t, 0)),
                full(w1.shape), full(b1.shape),
                full(w2.shape), full(b2.shape),
                full(w3.shape),
            ],
            out_specs=pl.BlockSpec((1, 1, 1024), lambda b, s, t: (b, s, 0)),
            scratch_shapes=[pltpu.VMEM((8, 1024), jnp.float32)],
        ),
        compiler_params=pltpu.CompilerParams(
            dimension_semantics=("parallel", "parallel", "arbitrary")),
        cost_estimate=pl.CostEstimate(flops=flops, transcendentals=0,
                                      bytes_accessed=bytes_accessed),
    )(x, w1, b1, w2, b2, w3)

    # Cross-split max + hoisted conv3 bias + ReLU (exact transform).
    feat = jnp.maximum(jnp.max(partial_max, axis=1) + b3, 0.0)    # (B, 1024)

    # Tiny FC head: plain XLA GEMMs per perf review (launch-overhead dominated
    # as a pallas_call; not a bottleneck on any TPU generation).
    h = jnp.maximum(_mm_bf16(feat, w4) + b4, 0.0)
    h = jnp.maximum(_mm_bf16(h, w5) + b5, 0.0)
    y = _mm_bf16(h, w6) + b6                                      # identity folded into b6
    return y.reshape(B, 3, 3)


# ----------------------------------------------------------------------------
# Pure-JAX reference with the same bf16-matmul / f32-accumulate numerics.
# ----------------------------------------------------------------------------
def stn3d_reference(x_bcn, params):
    B = x_bcn.shape[0]
    x = jnp.transpose(x_bcn, (0, 2, 1))
    w1, b1 = _fold_bn(params["w1"], params["b1"], *params["bn1"])
    w2, b2 = _fold_bn(params["w2"], params["b2"], *params["bn2"])
    w3, b3 = _fold_bn(params["w3"], params["b3"], *params["bn3"])
    w4, b4 = _fold_bn(params["w4"], params["b4"], *params["bn4"])
    w5, b5 = _fold_bn(params["w5"], params["b5"], *params["bn5"])

    def mm(a, w):
        return jnp.dot(a.astype(jnp.bfloat16), w.astype(jnp.bfloat16),
                       preferred_element_type=jnp.float32)

    h = jax.nn.relu(mm(x, w1) + b1)
    h = jax.nn.relu(mm(h, w2) + b2)
    h = jax.nn.relu(mm(h, w3) + b3)
    f = jnp.max(h, axis=1)
    h = jax.nn.relu(mm(f, w4) + b4)
    h = jax.nn.relu(mm(h, w5) + b5)
    y = mm(h, params["w6"]) + params["b6"][None, :]
    y = y + jnp.eye(3, dtype=jnp.float32).reshape(1, 9)
    return y.reshape(B, 3, 3)


def init_params(key, channel):
    ks = jax.random.split(key, 16)

    def lin(k, fan_in, fan_out):
        bound = 1.0 / jnp.sqrt(fan_in)
        kw, kb = jax.random.split(k)
        w = jax.random.uniform(kw, (fan_in, fan_out), jnp.float32, -bound, bound)
        b = jax.random.uniform(kb, (fan_out,), jnp.float32, -bound, bound)
        return w, b

    def bn(k, n):
        k1, k2, k3, k4 = jax.random.split(k, 4)
        gamma = 1.0 + 0.1 * jax.random.normal(k1, (n,), jnp.float32)
        beta = 0.1 * jax.random.normal(k2, (n,), jnp.float32)
        mean = 0.1 * jax.random.normal(k3, (n,), jnp.float32)
        var = 1.0 + 0.1 * jnp.abs(jax.random.normal(k4, (n,), jnp.float32))
        return (gamma, beta, mean, var)

    p = {}
    p["w1"], p["b1"] = lin(ks[0], channel, 64)
    p["w2"], p["b2"] = lin(ks[1], 64, 128)
    p["w3"], p["b3"] = lin(ks[2], 128, 1024)
    p["w4"], p["b4"] = lin(ks[3], 1024, 512)
    p["w5"], p["b5"] = lin(ks[4], 512, 256)
    p["w6"], p["b6"] = lin(ks[5], 256, 9)
    p["bn1"] = bn(ks[6], 64)
    p["bn2"] = bn(ks[7], 128)
    p["bn3"] = bn(ks[8], 1024)
    p["bn4"] = bn(ks[9], 512)
    p["bn5"] = bn(ks[10], 256)
    return p


if __name__ == "__main__":
    key = jax.random.PRNGKey(0)
    k_x1, k_x2, k_p = jax.random.split(key, 3)

    B, C = 2, 3
    params = init_params(k_p, C)

    # Case 1: small N (single tile after padding to ROW_BLOCK), default tiling.
    x1 = jax.random.normal(k_x1, (B, C, 16), dtype=jnp.float32)
    out1 = jax.block_until_ready(stn3d_forward(x1, params))
    ref1 = stn3d_reference(x1, params)
    assert out1.shape == (B, 3, 3), out1.shape
    assert jnp.allclose(out1, ref1, atol=2e-3, rtol=2e-3), (
        float(jnp.max(jnp.abs(out1 - ref1))))

    # Case 2: multi-tile + remainder padding + 2-way point split
    # (N=500 -> padded 512, tile=128 -> 4 tiles -> 2 splits x 2 tiles).
    x2 = jax.random.normal(k_x2, (B, C, 500), dtype=jnp.float32)
    out2 = jax.block_until_ready(stn3d_forward(x2, params, tile_n_max=128))
    ref2 = stn3d_reference(x2, params)
    assert out2.shape == (B, 3, 3), out2.shape
    assert jnp.allclose(out2, ref2, atol=2e-3, rtol=2e-3), (
        float(jnp.max(jnp.abs(out2 - ref2))))

    print("KERNEL_OK")
</pallas_src>

<mosaic_0001>
module attributes {stable_mosaic.version = 11 : i64} {
  func.func @point_feat_kernel(%arg0: i32, %arg1: i32, %arg2: i32, %arg3: memref<1x128x3xbf16, #tpu.memory_space<vmem>>, %arg4: memref<3x64xbf16, #tpu.memory_space<vmem>>, %arg5: memref<1x64xf32, #tpu.memory_space<vmem>>, %arg6: memref<64x128xbf16, #tpu.memory_space<vmem>>, %arg7: memref<1x128xf32, #tpu.memory_space<vmem>>, %arg8: memref<128x1024xbf16, #tpu.memory_space<vmem>>, %arg9: memref<1x1x1024xf32, #tpu.memory_space<vmem>>, %arg10: memref<8x1024xf32, #tpu.memory_space<vmem>>) attributes {dimension_semantics = [#tpu.dimension_semantics<parallel>, #tpu.dimension_semantics<parallel>, #tpu.dimension_semantics<arbitrary>], iteration_bounds = array<i64: 2, 1, 1>, scalar_prefetch = 0 : i64, scratch_operands = 1 : i64, tpu.core_type = #tpu.core_type<tc>, window_params = [{transform_indices = @transform_0, window_bounds = array<i64: 1, 128, 3>}, {pipeline_mode = #tpu.pipeline_mode<synchronous>, transform_indices = @transform_1, window_bounds = array<i64: 3, 64>}, {pipeline_mode = #tpu.pipeline_mode<synchronous>, transform_indices = @transform_2, window_bounds = array<i64: 1, 64>}, {pipeline_mode = #tpu.pipeline_mode<synchronous>, transform_indices = @transform_3, window_bounds = array<i64: 64, 128>}, {pipeline_mode = #tpu.pipeline_mode<synchronous>, transform_indices = @transform_4, window_bounds = array<i64: 1, 128>}, {pipeline_mode = #tpu.pipeline_mode<synchronous>, transform_indices = @transform_5, window_bounds = array<i64: 128, 1024>}, {transform_indices = @transform_6, window_bounds = array<i64: 1, 1, 1024>}]} {
    %c0_i32 = arith.constant 0 : i32
    %0 = arith.cmpi eq, %arg2, %c0_i32 : i32
    %1 = arith.extui %0 : i1 to i32
    %c0_i32_0 = arith.constant 0 : i32
    %2 = arith.cmpi ne, %1, %c0_i32_0 : i32
    scf.if %2 {
      %cst_45 = arith.constant 0xFF800000 : f32
      %52 = vector.broadcast %cst_45 : f32 to vector<8x1024xf32>
      %c0_46 = arith.constant 0 : index
      %c0_47 = arith.constant 0 : index
      %53 = vector.load %arg10[%c0_46, %c0_47] : memref<8x1024xf32, #tpu.memory_space<vmem>>, vector<8x1024xf32>
      tpu.vector_store %arg10[%c0_46, %c0_47], %52 {strides = array<i32>} : memref<8x1024xf32, #tpu.memory_space<vmem>>, vector<8x1024xf32>,
    } else {
    }
    %c0 = arith.constant 0 : index
    %c0_1 = arith.constant 0 : index
    %c0_2 = arith.constant 0 : index
    %3 = vector.load %arg3[%c0, %c0_1, %c0_2] : memref<1x128x3xbf16, #tpu.memory_space<vmem>>, vector<1x128x3xbf16>
    %4 = vector.shape_cast %3 : vector<1x128x3xbf16> to vector<128x3xbf16>
    %c0_3 = arith.constant 0 : index
    %c0_4 = arith.constant 0 : index
    %5 = vector.load %arg4[%c0_3, %c0_4] : memref<3x64xbf16, #tpu.memory_space<vmem>>, vector<3x64xbf16>
    %cst = arith.constant dense<0.000000e+00> : vector<128x64xf32>
    %6 = tpu.matmul %4, %5, %cst {dimension_numbers = #tpu.dot_dimension_numbers<[1], [0], [0], [1], [0, 0, 1, 1], [], []>} : vector<128x3xbf16>, vector<3x64xbf16>, vector<128x64xf32> -> vector<128x64xf32>
    %c0_5 = arith.constant 0 : index
    %c0_6 = arith.constant 0 : index
    %7 = vector.load %arg5[%c0_5, %c0_6] : memref<1x64xf32, #tpu.memory_space<vmem>>, vector<1x64xf32>
    %8 = vector.broadcast %7 : vector<1x64xf32> to vector<128x64xf32>
    %9 = arith.addf %6, %8 : vector<128x64xf32>
    %cst_7 = arith.constant 0.000000e+00 : f32
    %10 = vector.broadcast %cst_7 : f32 to vector<128x64xf32>
    %11 = arith.maximumf %9, %10 : vector<128x64xf32>
    %12 = arith.truncf %11 : vector<128x64xf32> to vector<128x64xbf16>
    %c0_8 = arith.constant 0 : index
    %c0_9 = arith.constant 0 : index
    %13 = vector.load %arg6[%c0_8, %c0_9] : memref<64x128xbf16, #tpu.memory_space<vmem>>, vector<64x128xbf16>
    %cst_10 = arith.constant dense<0.000000e+00> : vector<128x128xf32>
    %14 = tpu.matmul %12, %13, %cst_10 {dimension_numbers = #tpu.dot_dimension_numbers<[1], [0], [0], [1], [0, 0, 1, 1], [], []>} : vector<128x64xbf16>, vector<64x128xbf16>, vector<128x128xf32> -> vector<128x128xf32>
    %c0_11 = arith.constant 0 : index
    %c0_12 = arith.constant 0 : index
    %15 = vector.load %arg7[%c0_11, %c0_12] : memref<1x128xf32, #tpu.memory_space<vmem>>, vector<1x128xf32>
    %16 = vector.broadcast %15 : vector<1x128xf32> to vector<128x128xf32>
    %17 = arith.addf %14, %16 : vector<128x128xf32>
    %cst_13 = arith.constant 0.000000e+00 : f32
    %18 = vector.broadcast %cst_13 : f32 to vector<128x128xf32>
    %19 = arith.maximumf %17, %18 : vector<128x128xf32>
    %20 = arith.truncf %19 : vector<128x128xf32> to vector<128x128xbf16>
    %c0_14 = arith.constant 0 : index
    %c0_15 = arith.constant 0 : index
    %21 = vector.load %arg8[%c0_14, %c0_15] : memref<128x1024xbf16, #tpu.memory_space<vmem>>, vector<128x256xbf16>
    %c0_16 = arith.constant 0 : index
    %c0_17 = arith.constant 0 : index
    %22 = vector.load %arg10[%c0_16, %c0_17] : memref<8x1024xf32, #tpu.memory_space<vmem>>, vector<8x256xf32>
    %cst_18 = arith.constant dense<0.000000e+00> : vector<128x256xf32>
    %23 = tpu.matmul %20, %21, %cst_18 {dimension_numbers = #tpu.dot_dimension_numbers<[1], [0], [0], [1], [0, 0, 1, 1], [], []>} : vector<128x128xbf16>, vector<128x256xbf16>, vector<128x256xf32> -> vector<128x256xf32>
    %24 = vector.shape_cast %23 : vector<128x256xf32> to vector<16x8x256xf32>
    %cst_19 = arith.constant dense<0xFF800000> : vector<8x256xf32>
    %25 = vector.multi_reduction <maximumf>, %24, %cst_19 [0] : vector<16x8x256xf32> to vector<8x256xf32>
    %26 = arith.maximumf %22, %25 : vector<8x256xf32>
    %c0_20 = arith.constant 0 : index
    %c0_21 = arith.constant 0 : index
    %27 = vector.load %arg10[%c0_20, %c0_21] : memref<8x1024xf32, #tpu.memory_space<vmem>>, vector<8x256xf32>
    tpu.vector_store %arg10[%c0_20, %c0_21], %26 {strides = array<i32>} : memref<8x1024xf32, #tpu.memory_space<vmem>>, vector<8x256xf32>,
    %c0_22 = arith.constant 0 : index
    %c256 = arith.constant 256 : index
    %28 = vector.load %arg8[%c0_22, %c256] : memref<128x1024xbf16, #tpu.memory_space<vmem>>, vector<128x256xbf16>
    %c0_23 = arith.constant 0 : index
    %c256_24 = arith.constant 256 : index
    %29 = vector.load %arg10[%c0_23, %c256_24] : memref<8x1024xf32, #tpu.memory_space<vmem>>, vector<8x256xf32>
    %cst_25 = arith.constant dense<0.000000e+00> : vector<128x256xf32>
    %30 = tpu.matmul %20, %28, %cst_25 {dimension_numbers = #tpu.dot_dimension_numbers<[1], [0], [0], [1], [0, 0, 1, 1], [], []>} : vector<128x128xbf16>, vector<128x256xbf16>, vector<128x256xf32> -> vector<128x256xf32>
    %31 = vector.shape_cast %30 : vector<128x256xf32> to vector<16x8x256xf32>
    %cst_26 = arith.constant dense<0xFF800000> : vector<8x256xf32>
    %32 = vector.multi_reduction <maximumf>, %31, %cst_26 [0] : vector<16x8x256xf32> to vector<8x256xf32>
    %33 = arith.maximumf %29, %32 : vector<8x256xf32>
    %c0_27 = arith.constant 0 : index
    %c256_28 = arith.constant 256 : index
    %34 = vector.load %arg10[%c0_27, %c256_28] : memref<8x1024xf32, #tpu.memory_space<vmem>>, vector<8x256xf32>
    tpu.vector_store %arg10[%c0_27, %c256_28], %33 {strides = array<i32>} : memref<8x1024xf32, #tpu.memory_space<vmem>>, vector<8x256xf32>,
    %c0_29 = arith.constant 0 : index
    %c512 = arith.constant 512 : index
    %35 = vector.load %arg8[%c0_29, %c512] : memref<128x1024xbf16, #tpu.memory_space<vmem>>, vector<128x256xbf16>
    %c0_30 = arith.constant 0 : index
    %c512_31 = arith.constant 512 : index
    %36 = vector.load %arg10[%c0_30, %c512_31] : memref<8x1024xf32, #tpu.memory_space<vmem>>, vector<8x256xf32>
    %cst_32 = arith.constant dense<0.000000e+00> : vector<128x256xf32>
    %37 = tpu.matmul %20, %35, %cst_32 {dimension_numbers = #tpu.dot_dimension_numbers<[1], [0], [0], [1], [0, 0, 1, 1], [], []>} : vector<128x128xbf16>, vector<128x256xbf16>, vector<128x256xf32> -> vector<128x256xf32>
    %38 = vector.shape_cast %37 : vector<128x256xf32> to vector<16x8x256xf32>
    %cst_33 = arith.constant dense<0xFF800000> : vector<8x256xf32>
    %39 = vector.multi_reduction <maximumf>, %38, %cst_33 [0] : vector<16x8x256xf32> to vector<8x256xf32>
    %40 = arith.maximumf %36, %39 : vector<8x256xf32>
    %c0_34 = arith.constant 0 : index
    %c512_35 = arith.constant 512 : index
    %41 = vector.load %arg10[%c0_34, %c512_35] : memref<8x1024xf32, #tpu.memory_space<vmem>>, vector<8x256xf32>
    tpu.vector_store %arg10[%c0_34, %c512_35], %40 {strides = array<i32>} : memref<8x1024xf32, #tpu.memory_space<vmem>>, vector<8x256xf32>,
    %c0_36 = arith.constant 0 : index
    %c768 = arith.constant 768 : index
    %42 = vector.load %arg8[%c0_36, %c768] : memref<128x1024xbf16, #tpu.memory_space<vmem>>, vector<128x256xbf16>
    %c0_37 = arith.constant 0 : index
    %c768_38 = arith.constant 768 : index
    %43 = vector.load %arg10[%c0_37, %c768_38] : memref<8x1024xf32, #tpu.memory_space<vmem>>, vector<8x256xf32>
    %cst_39 = arith.constant dense<0.000000e+00> : vector<128x256xf32>
    %44 = tpu.matmul %20, %42, %cst_39 {dimension_numbers = #tpu.dot_dimension_numbers<[1], [0], [0], [1], [0, 0, 1, 1], [], []>} : vector<128x128xbf16>, vector<128x256xbf16>, vector<128x256xf32> -> vector<128x256xf32>
    %45 = vector.shape_cast %44 : vector<128x256xf32> to vector<16x8x256xf32>
    %cst_40 = arith.constant dense<0xFF800000> : vector<8x256xf32>
    %46 = vector.multi_reduction <maximumf>, %45, %cst_40 [0] : vector<16x8x256xf32> to vector<8x256xf32>
    %47 = arith.maximumf %43, %46 : vector<8x256xf32>
    %c0_41 = arith.constant 0 : index
    %c768_42 = arith.constant 768 : index
    %48 = vector.load %arg10[%c0_41, %c768_42] : memref<8x1024xf32, #tpu.memory_space<vmem>>, vector<8x256xf32>
    tpu.vector_store %arg10[%c0_41, %c768_42], %47 {strides = array<i32>} : memref<8x1024xf32, #tpu.memory_space<vmem>>, vector<8x256xf32>,
    %c0_i32_43 = arith.constant 0 : i32
    %49 = arith.cmpi eq, %arg2, %c0_i32_43 : i32
    %50 = arith.extui %49 : i1 to i32
    %c0_i32_44 = arith.constant 0 : i32
    %51 = arith.cmpi ne, %50, %c0_i32_44 : i32
    scf.if %51 {
      %c0_45 = arith.constant 0 : index
      %c0_46 = arith.constant 0 : index
      %52 = vector.load %arg10[%c0_45, %c0_46] : memref<8x1024xf32, #tpu.memory_space<vmem>>, vector<8x1024xf32>
      %cst_47 = arith.constant dense<0xFF800000> : vector<1024xf32>
      %53 = vector.multi_reduction <maximumf>, %52, %cst_47 [0] : vector<8x1024xf32> to vector<1024xf32>
      %54 = vector.shape_cast %53 : vector<1024xf32> to vector<1x1024xf32>
      %55 = vector.shape_cast %54 : vector<1x1024xf32> to vector<1x1x1024xf32>
      %c0_48 = arith.constant 0 : index
      %c0_49 = arith.constant 0 : index
      %c0_50 = arith.constant 0 : index
      %56 = vector.load %arg9[%c0_48, %c0_49, %c0_50] : memref<1x1x1024xf32, #tpu.memory_space<vmem>>, vector<1x1x1024xf32>
      tpu.vector_store %arg9[%c0_48, %c0_49, %c0_50], %55 {strides = array<i32>} : memref<1x1x1024xf32, #tpu.memory_space<vmem>>, vector<1x1x1024xf32>,
    } else {
    }
    return
  }
  func.func @transform_0(%arg0: i32, %arg1: i32, %arg2: i32) -> (i32, i32, i32) {
    %c1_i32 = arith.constant 1 : i32
    %0 = arith.muli %arg1, %c1_i32 : i32
    %1 = arith.addi %0, %arg2 : i32
    %c0_i32 = arith.constant 0 : i32
    %c0_i32_0 = arith.constant 0 : i32
    return %arg0, %1, %c0_i32 : i32, i32, i32
  }
  func.func @transform_1(%arg0: i32, %arg1: i32, %arg2: i32) -> (i32, i32) {
    %c0_i32 = arith.constant 0 : i32
    %c0_i32_0 = arith.constant 0 : i32
    %c0_i32_1 = arith.constant 0 : i32
    return %c0_i32, %c0_i32_0 : i32, i32
  }
  func.func @transform_2(%arg0: i32, %arg1: i32, %arg2: i32) -> (i32, i32) {
    %c0_i32 = arith.constant 0 : i32
    %c0_i32_0 = arith.constant 0 : i32
    %c0_i32_1 = arith.constant 0 : i32
    return %c0_i32, %c0_i32_0 : i32, i32
  }
  func.func @transform_3(%arg0: i32, %arg1: i32, %arg2: i32) -> (i32, i32) {
    %c0_i32 = arith.constant 0 : i32
    %c0_i32_0 = arith.constant 0 : i32
    %c0_i32_1 = arith.constant 0 : i32
    return %c0_i32, %c0_i32_0 : i32, i32
  }
  func.func @transform_4(%arg0: i32, %arg1: i32, %arg2: i32) -> (i32, i32) {
    %c0_i32 = arith.constant 0 : i32
    %c0_i32_0 = arith.constant 0 : i32
    %c0_i32_1 = arith.constant 0 : i32
    return %c0_i32, %c0_i32_0 : i32, i32
  }
  func.func @transform_5(%arg0: i32, %arg1: i32, %arg2: i32) -> (i32, i32) {
    %c0_i32 = arith.constant 0 : i32
    %c0_i32_0 = arith.constant 0 : i32
    %c0_i32_1 = arith.constant 0 : i32
    return %c0_i32, %c0_i32_0 : i32, i32
  }
  func.func @transform_6(%arg0: i32, %arg1: i32, %arg2: i32) -> (i32, i32, i32) {
    %c0_i32 = arith.constant 0 : i32
    %c0_i32_0 = arith.constant 0 : i32
    return %arg0, %arg1, %c0_i32 : i32, i32, i32
  }
}

</mosaic_0001>

<bundles_post_ra>
// kernel: tpu_custom_call.1
= control target key start
LH: loop header
LB: loop body
LE: loop exit
PB: predicated region body
PF: predicated region fallthrough
CT: control target
= control target key end

     0   :  { %11 = vsyncpa [#allocation4], 0  ;;  %s2689_s0 = inlined_call_operand.vmem [shape: bf16[2,128,3], index: 0, kind: input, shape index: {}]   ;;  %s2690_s1 = inlined_call_operand.vmem [shape: bf16[3,64], index: 1, kind: input, shape index: {}]   ;;  %s2691_s2 = inlined_call_operand.vmem [shape: f32[1,64], index: 2, kind: input, shape index: {}]   ;;  %s2692_s3 = inlined_call_operand.vmem [shape: bf16[64,128], index: 3, kind: input, shape index: {}]   ;;  %s2693_s4 = inlined_call_operand.vmem [shape: f32[1,128], index: 4, kind: input, shape index: {}]   ;;  %s2694_s5 = inlined_call_operand.hbm [shape: bf16[128,1024], index: 5, kind: input, shape index: {}]   ;;  %s2695_s6 = inlined_call_operand.hbm [shape: f32[2,1,1024], index: 6, kind: output, shape index: {}]  }
   0x1   :  { %12 = vsyncpa [#allocation5], 0 }
   0x2   :  { %14 = vsyncpa [#allocation5 + $0x1], 0  ;;  %s2388_s21 = smov 0   ;;  %s2390_s22 = smov 0  }
   0x3   :  { %s2392_s23 = smov 0   ;;  %s2394_s24 = smov 0  }
   0x4   :  { %s2396_s25 = smov 0   ;;  %s2398_s26 = smov 0  }
   0x5 LB: > { %s1740_s27 = sadd.s32 4294967295, %s2347_s26   ;;  %s1741_s28 = sadd.s32 4294967294, %s2347_s26   ;;  %s2347_s26 = sphi %s2398_s26, %s20_s26   ;;  %s2343_s25 = sphi %s2396_s25, %s2702_s25   ;;  %s2339_s24 = sphi %s2394_s24, %s2701_s24   ;;  %s2335_s23 = sphi %s2392_s23, %s2700_s23   ;;  %s2331_s22 = sphi %s2390_s22, %s2699_s22   ;;  %s2327_s21 = sphi %s2388_s21, %s2698_s21  }
   0x6   : > { %s39_s29 = sadd.s32 1, %s2343_s25  ;;  %s183_s30 = sadd.s32 1, %s2335_s23 }
   0x7   : > { %p41_p0 = scmp.ge.s32.totalorder %s39_s29, 2  ;;  %p193_p1 = scmp.ne.s32.totalorder %s2335_s23, %s2331_s22 }
   0x8   : > { %p194_p2 = scmp.eq.s32.totalorder %s1740_s27, 1  ;;  %p199_p3 = scmp.ne.s32.totalorder %s2331_s22, %s2327_s21 }
   0x9   : > { %s2704_s29 = smov (%p41_p0, %s39_s29), 0  ;;  %p200_p5 = scmp.eq.s32.totalorder %s1741_s28, 1 }
   0xa   : > { %p2428_p4 = por %p194_p2, %p193_p1  ;;  %s178_s8 = ssub.s32 %s2343_s25, %s2704_s29 }
   0xb   : > { %p1742_p6 = scmp.ge.s32.totalorder %s2347_s26, 1  ;;  %p181_p7 = scmp.eq.s32.totalorder %s178_s8, 0 }
   0xc   : > { %p2435_p8 = por %p200_p5, %p199_p3  ;;  %p207_p9 = scmp.lt.s32.totalorder %s2347_s26, 3 }
   0xd   : > { %s2441_s10 = scalar_select %p181_p7, %s2335_s23, %s183_s30  }
   0xe   : > { %p208_p10 = pnand %p1742_p6, %p207_p9  ;;  %p2178_p11 = scmp.eq.s32.totalorder %s1740_s27, 0 }
   0xf   : > { %s230_s13 = sshll.u32 %s2694_s5, 4  ;;  %s2349_s14 = smov [#allocation3]   ;;  %s231_s13 = int_to_ptr.hbm [resolvable:$true] %s230_s13 }
  0x10   : > { %p2170_p12 = pneg %p208_p10  ;;  %s232_s15 = sshll.u32 %s2349_s14, 4  ;;  %s233_s15 = int_to_ptr.vmem [resolvable:$true] %s232_s15 }
  0x11   : > { %s2350_s16 = smov 512   ;;  %s2351_s17 = smov 32  }
  0x12   : > { %p2171_p13 = pnand %p2178_p11, %p2170_p12  ;;  %263 = sbr.rel (%p208_p10) target bundleno = 732 (0x2dc), region = 44 }
  0x14   : > { %2173 = dma.hbm_to_vmem [thread:$0]  (!%p2171_p13), %s231_s13, 8192, %s233_s15, [#allocation4], %s2350_s16, %s2350_s16, %s2351_s17  }
  0x17   : > { %2318 = dma.done.wait (%p2178_p11), [#allocation4], 8192  }
  0x18   : > { %2320 = vsyncadd (%p2178_p11), [#allocation4], 4294959104  ;;  %vm410_vm0 = vcmask 1040384   ;;  %p301_p0 = scmp.lt.s32.totalorder %s2339_s24, 1  ;;  %vm411_vm1 = vcmask 1041408   ;;  %v2352_v0 = vmov 65535  }
  0x19   : > { %v412_v1 = vsel %vm410_vm0, 4294967295, %v2352_v0  ;;  %v340_v3 = vld [vmem:[%s2690_s1] sm:$0x3]  ;;  %vm385_vm2 = vcmask 23552   ;;  %v2086_v13 = vld [vmem:[%s2692_s3 + $0x18] sm:$0xff]  ;;  %v2085_v14 = vld [vmem:[%s2692_s3 + $0x10] sm:$0xff] }
  0x1a   : > { %s302_s18 = scalar_select %p301_p0, %s2339_s24, 1  ;;  %v413_v2 = vsel %vm411_vm1, %v412_v1, 0  ;;  %555 = vmatpush.bf16.msra.mxu1 %v2086_v13  ;;  %2152 = vmatpush.bf16.msra.mxu2 %v2086_v13  ;;  %v2084_v15 = vld [vmem:[%s2692_s3 + $0x8] sm:$0xff]  ;;  %v2083_v16 = vld [vmem:[%s2692_s3] sm:$0xff]  ;;  %vm526_vm3 = vcmask 523264   ;;  %vm1619_vm4 = vcmask 1042434  }
  0x1b   : > { %v415_v4 = vand.u32 %v413_v2, %v340_v3  ;;  %v2479_v18 = vld [vmem:[%s2691_s2] ss:$0 sm:$0xff]  ;;  %v1936_v48 = vld [vmem:[#allocation3 + $0x1c8] sm:$0xf]  ;;  %v2101_v50 = vld [vmem:[#allocation3 + $0x1c4] sm:$0xf] }
  0x1c   : > { %s2074_s19 = sshll.u32 %s302_s18, 6  ;;  %v2118_v49 = vld [vmem:[#allocation3 + $0x1e4] sm:$0xf0]  ;;  %v1874_v53 = vld [vmem:[#allocation3 + $0x1e0] sm:$0xf0]  ;;  %vm1622_vm5 = vcmask 1044484  }
  0x1d   : > { %s308_s28 = scalar_lea.vmem %s2689_s0, %s2074_s19  ;;  %424 = vmatpush.bf16.msra.mxu0 %v415_v4  ;;  %2151 = vmatpush.bf16.msra.mxu3 %v415_v4  ;;  %v1937_v52 = vor.u32 %v2118_v49, %v1936_v48  ;;  %v1928_v54 = vld [vmem:[#allocation3 + $0x188] sm:$0xf]  ;;  %v1877_v56 = vor.u32 %v2101_v50, %v1874_v53  ;;  %v2117_v57 = vld [vmem:[#allocation3 + $0x1cc] sm:$0xf]  ;;  %v2099_v59 = vld [vmem:[#allocation3 + $0x184] sm:$0xf] }
  0x1e   : > { %v2075_v5 = vld [vmem:[%s308_s28] sm:$0xff]  ;;  %v2076_v6 = vld [vmem:[%s308_s28 + $0x8] sm:$0xff]  ;;  %v2077_v8 = vld [vmem:[%s308_s28 + $0x10] sm:$0xff]  ;;  %556 = vmatpush.bf16.msra.mxu1 %v2085_v14  ;;  %2153 = vmatpush.bf16.msra.mxu2 %v2085_v14  ;;  %s296_s30 = sand.u32 1, %s2331_s22   ;;  %s2071_s11 = sshll.u32 %s2339_s24, 3  ;;  %vm1624_vm6 = vcmask 1046534  }
  0x1f   : > { %v2080_v7 = vld [vmem:[%s308_s28 + $0x28] sm:$0xff]  ;;  %v2081_v9 = vld [vmem:[%s308_s28 + $0x30] sm:$0xff]  ;;  %v2078_v10 = vld [vmem:[%s308_s28 + $0x18] sm:$0xff]  ;;  %s1747_s8 = sshll.u32 %s296_s30, 3  ;;  %s1645_s14 = scalar_lea.hbm %s2695_s6, %s2071_s11  ;;  %vm1626_vm7 = vcmask 1045508   ;;  %vm1628_vm8 = vcmask 1043456  }
  0x20   : > { %1782 = vmatmul.msk.bf16.vlgmr.msra.gmra.mxu0 %vm385_vm2, %v2075_v5  ;;  %1787 = vmatmul.msk.bf16.vlgmr.msra.gmra.mxu3 %vm385_vm2, %v2080_v7  ;;  %v2082_v11 = vld [vmem:[%s308_s28 + $0x38] sm:$0xff]  ;;  %v2079_v12 = vld [vmem:[%s308_s28 + $0x20] sm:$0xff]  ;;  %v2116_v55 = vld [vmem:[#allocation3 + $0x1a4] sm:$0xf0]  ;;  %s298_s15 = scalar_lea.vmem [#allocation6], %s1747_s8  ;;  %s1649_s17 = sshll.u32 %s1645_s14, 4  ;;  %s1650_s17 = int_to_ptr.hbm [resolvable:$true] %s1649_s17 }
  0x21   : > { %v1938_v58 = vld [vmem:[#allocation3 + $0x1e8] sm:$0xf0]  ;;  %952 = vmatpush.bf16.msrb.mxu0 %v1937_v52  ;;  %v1929_v62 = vor.u32 %v2116_v55, %v1928_v54  ;;  %v1866_v0 = vld [vmem:[#allocation3 + $0x1a0] sm:$0xf0]  ;;  %v1920_v1 = vld [vmem:[#allocation3 + $0x148] sm:$0xf]  ;;  %771 = vmatpush.bf16.msrb.mxu3 %v1877_v56 }
  0x22   : > { %557 = vmatpush.bf16.msra.mxu1 %v2084_v15  ;;  %2154 = vmatpush.bf16.msra.mxu2 %v2084_v15  ;;  %v1941_v63 = vor.u32 %v2117_v57, %v1938_v58  ;;  %v1869_v3 = vor.u32 %v2099_v59, %v1866_v0  ;;  %v2114_v4 = vld [vmem:[#allocation3 + $0x164] sm:$0xf0]  ;;  %v2097_v5 = vld [vmem:[#allocation3 + $0x144] sm:$0xf]  ;;  %v2115_v7 = vld [vmem:[#allocation3 + $0x18c] sm:$0xf] }
  0x23   : > { %v1921_v13 = vor.u32 %v2114_v4, %v1920_v1  ;;  %v2095_v15 = vld [vmem:[#allocation3 + $0x104] sm:$0xf]  ;;  %v2096_v48 = vld [vmem:[#allocation3 + $0x11c] sm:$0xf0]  ;;  %s1647_s16 = sshll.u32 %s298_s15, 4  ;;  %s1633_s24 = scalar_lea.sflag [#allocation5], %s296_s30  ;;  %s1648_s16 = int_to_ptr.vmem [resolvable:$true] %s1647_s16 }
  0x24   : > { %v2091_v54 = vld [vmem:[#allocation3 + $0x84] sm:$0xf]  ;;  %v1840_v4 = vld [vmem:[#allocation3 + $0xc0] sm:$0xf]  ;;  %s2279_s18 = sshra.s32 %s1650_s17, 4  ;;  %s2285_s28 = scalar_lea.hbm %s2695_s6, 16  ;;  %s2280_s18 = int_to_ptr.hbm [resolvable:$true] %s2279_s18 }
  0x25   : > { %953 = vmatpush.bf16.msrb.mxu0 %v1929_v62  ;;  %772 = vmatpush.bf16.msrb.mxu3 %v1869_v3  ;;  %v1834_v55 = vld [vmem:[#allocation3 + $0xa0] sm:$0xf0]  ;;  %s2281_s19 = scalar_lea.hbm %s2280_s18, 8  ;;  %p2286_p5 = scmp.lt.s32.totalorder %s2280_s18, %s2695_s6 }
  0x26   : > { %558 = vmatpush.bf16.msra.mxu1 %v2083_v16  ;;  %2155 = vmatpush.bf16.msra.mxu2 %v2083_v16  ;;  %v1912_v16 = vld [vmem:[#allocation3 + $0x108] sm:$0xf]  ;;  %v1837_v59 = vor.u32 %v2091_v54, %v1834_v55  ;;  %v2064_v54 = vld [vmem:[#allocation3 + $0x1d8] sm:$0xf]  ;;  %p2282_p1 = scmp.ne.s32.totalorder %s2280_s18, %s2281_s19  ;;  %p2287_p6 = scmp.lt.s32.totalorder %s2285_s28, %s2281_s19 }
  0x27   : > { %v2150_v55 = vld [vmem:[#allocation3 + $0x1f4] sm:$0xf0] }
  0x28   : > { %p2283_p2 = pnand %p2282_p1, %p2428_p4  ;;  %p2288_p7 = por %p2287_p6, %p2286_p5 }
  0x29   : > { %954 = vmatpush.bf16.msrb.mxu0 %v1921_v13 }
  0x2a   : > { %1001 = vmatpush.bf16.msrb.mxu1 %v1941_v63  ;;  %p2284_p3 = pneg %p2283_p2 }
  0x2c   : > { %p2289_p9 = pnand %p2288_p7, %p2284_p3 }
  0x30   : > { %1783 = vmatmul.msk.bf16.gmra.mxu0 %vm385_vm2, %v2076_v6  ;;  %1788 = vmatmul.msk.bf16.gmra.mxu3 %vm385_vm2, %v2081_v9  ;;  %v1858_v6 = vld [vmem:[#allocation3 + $0x160] sm:$0xf0]  ;;  %v1872_v9 = vld [vmem:[#allocation3 + $0x1c0] sm:$0xf] }
  0x40   : > { %1784 = vmatmul.msk.bf16.gmra.mxu0 %vm385_vm2, %v2077_v8  ;;  %1789 = vmatmul.msk.bf16.gmra.mxu3 %vm385_vm2, %v2082_v11  ;;  %v1930_v8 = vld [vmem:[#allocation3 + $0x1a8] sm:$0xf0] }
  0x41   : > { %v1933_v11 = vor.u32 %v2115_v7, %v1930_v8  ;;  %v1906_v8 = vld [vmem:[#allocation3 + $0xe8] sm:$0xf0] }
  0x43   : > { %1002 = vmatpush.bf16.msrb.mxu1 %v1933_v11  ;;  %v2092_v11 = vld [vmem:[#allocation3 + $0x9c] sm:$0xf0] }
  0x50   : > { %1785 = vmatmul.msk.bf16.gmra.mxu0 %vm385_vm2, %v2078_v10 }
  0x60   : > { %1786 = vmatmul.msk.bf16.gmra.mxu0 %vm385_vm2, %v2079_v12  ;;  %v2102_v12 = vld [vmem:[#allocation3 + $0x1dc] sm:$0xf0] }
  0x61   : > { %v1873_v14 = vor.u32 %v2102_v12, %v1872_v9  ;;  %v1896_v12 = vld [vmem:[#allocation3 + $0x88] sm:$0xf] }
  0x63   : > { %722 = vmatpush.bf16.msrb.mxu2 %v1873_v14  ;;  %v2107_v14 = vld [vmem:[#allocation3 + $0x8c] sm:$0xf] }
  0x9d   : > { %v426_v17 = vpop.f32.mrf.mxu0 }
  0x9e   : > { %v427_v19 = vadd.f32 %v2479_v18, %v426_v17 }
  0xa0   : > { %v466_v22 = vmax.f32 %v427_v19, 0.0 }
  0xa3   : > { %v451_v29 = vpop.f32.mrf.mxu3 }
  0xa4   : > { %v452_v33 = vadd.f32 %v2479_v18, %v451_v29 }
  0xa5   : > { %v428_v20 = vpop.f32.mrf.mxu0 }
  0xa6   : > { %v429_v21 = vadd.f32 %v2479_v18, %v428_v20  ;;  %v476_v36 = vmax.f32 %v452_v33, 0.0  ;;  %v1861_v20 = vor.u32 %v2097_v5, %v1858_v6  ;;  %v2094_v5 = vld [vmem:[#allocation3 + $0xdc] sm:$0xf0]  ;;  %v2109_v6 = vld [vmem:[#allocation3 + $0xcc] sm:$0xf] }
  0xa7   : > { %v1841_v7 = vor.u32 %v2094_v5, %v1840_v4  ;;  %v1909_v9 = vor.u32 %v2109_v6, %v1906_v8  ;;  %v1986_v4 = vld [vmem:[#allocation3 + $0x170] sm:$0xf0]  ;;  %v2149_v6 = vld [vmem:[#allocation3 + $0x1dc] sm:$0xf] }
  0xa8   : > { %v467_v23 = vmax.f32 %v429_v21, 0.0  ;;  %v2112_v21 = vld [vmem:[#allocation3 + $0x124] sm:$0xf0]  ;;  %773 = vmatpush.bf16.msrb.mxu3 %v1861_v20 }
  0xaa   : > { %v482_v24 = vpack.c.bf16 %v467_v23, %v466_v22  ;;  %v1864_v22 = vld [vmem:[#allocation3 + $0x180] sm:$0xf] }
  0xab   : > { %v453_v35 = vpop.f32.mrf.mxu3  ;;  %v2100_v23 = vld [vmem:[#allocation3 + $0x19c] sm:$0xf0] }
  0xac   : > { %1806 = vmatmul.msk.bf16.vlgmr.msra.gmra.mxu1 %vm526_vm3, %v482_v24  ;;  %v454_v37 = vadd.f32 %v2479_v18, %v453_v35  ;;  %v2111_v35 = vld [vmem:[#allocation3 + $0x10c] sm:$0xf] }
  0xad   : > { %v431_v25 = vpop.f32.mrf.mxu0 }
  0xae   : > { %v432_v26 = vadd.f32 %v2479_v18, %v431_v25  ;;  %v477_v38 = vmax.f32 %v454_v37, 0.0  ;;  %v1850_v25 = vld [vmem:[#allocation3 + $0x120] sm:$0xf0] }
  0xb0   : > { %v468_v30 = vmax.f32 %v432_v26, 0.0  ;;  %v487_v40 = vpack.c.bf16 %v477_v38, %v476_v36  ;;  %v1865_v26 = vor.u32 %v2100_v23, %v1864_v22  ;;  %v1914_v36 = vld [vmem:[#allocation3 + $0x128] sm:$0xf0]  ;;  %v1824_v22 = vld [vmem:[#allocation3 + $0x40] sm:$0xf] }
  0xb1   : > { %v2090_v23 = vld [vmem:[#allocation3 + $0x5c] sm:$0xf0] }
  0xb2   : > { %1811 = vmatmul.msk.bf16.vlgmr.msra.gmra.mxu2 %vm526_vm3, %v487_v40  ;;  %v2093_v40 = vld [vmem:[#allocation3 + $0xc4] sm:$0xf] }
  0xb3   : > { %v456_v43 = vpop.f32.mrf.mxu3  ;;  %723 = vmatpush.bf16.msrb.mxu2 %v1865_v26  ;;  %v2106_v26 = vld [vmem:[#allocation3 + $0x64] sm:$0xf0] }
  0xb4   : > { %v457_v47 = vadd.f32 %v2479_v18, %v456_v43  ;;  %v1917_v43 = vor.u32 %v2111_v35, %v1914_v36  ;;  %v2088_v35 = vld [vmem:[#allocation3 + $0x1c] sm:$0xf0]  ;;  %v1880_v36 = vld [vmem:[#allocation3 + $0x8] sm:$0xf] }
  0xb5   : > { %v433_v27 = vpop.f32.mrf.mxu0 }
  0xb6   : > { %v434_v28 = vadd.f32 %v2479_v18, %v433_v27  ;;  %v478_v60 = vmax.f32 %v457_v47, 0.0  ;;  %v2113_v27 = vld [vmem:[#allocation3 + $0x14c] sm:$0xf]  ;;  %v1848_v47 = vld [vmem:[#allocation3 + $0x100] sm:$0xf] }
  0xb7   : > { %v1849_v53 = vor.u32 %v2096_v48, %v1848_v47  ;;  %v2000_v47 = vld [vmem:[#allocation3 + $0x1d0] sm:$0xf] }
  0xb8   : > { %v469_v31 = vmax.f32 %v434_v28, 0.0  ;;  %v1922_v28 = vld [vmem:[#allocation3 + $0x168] sm:$0xf0]  ;;  %v2134_v48 = vld [vmem:[#allocation3 + $0x1ec] sm:$0xf0] }
  0xba   : > { %v483_v32 = vpack.c.bf16 %v469_v31, %v468_v30  ;;  %v1925_v30 = vor.u32 %v2113_v27, %v1922_v28  ;;  %v1856_v31 = vld [vmem:[#allocation3 + $0x140] sm:$0xf]  ;;  %v2105_v27 = vld [vmem:[#allocation3 + $0x4c] sm:$0xf] }
  0xbb   : > { %v458_v61 = vpop.f32.mrf.mxu3  ;;  %v1890_v28 = vld [vmem:[#allocation3 + $0x68] sm:$0xf0] }
  0xbc   : > { %1807 = vmatmul.msk.bf16.gmra.mxu1 %vm526_vm3, %v483_v32  ;;  %v459_v2 = vadd.f32 %v2479_v18, %v458_v61  ;;  %v2098_v32 = vld [vmem:[#allocation3 + $0x15c] sm:$0xf0] }
  0xbd   : > { %v436_v34 = vpop.f32.mrf.mxu0  ;;  %1003 = vmatpush.bf16.msrb.mxu1 %v1925_v30  ;;  %v1893_v30 = vor.u32 %v2105_v27, %v1890_v28  ;;  %v2048_v28 = vld [vmem:[#allocation3 + $0x158] sm:$0xf] }
  0xbe   : > { %v437_v39 = vadd.f32 %v2479_v18, %v436_v34  ;;  %v479_v10 = vmax.f32 %v459_v2, 0.0  ;;  %v1913_v34 = vor.u32 %v2112_v21, %v1912_v16  ;;  %v2089_v16 = vld [vmem:[#allocation3 + $0x44] sm:$0xf] }
  0xc0   : > { %v470_v44 = vmax.f32 %v437_v39, 0.0  ;;  %v488_v19 = vpack.c.bf16 %v479_v10, %v478_v60  ;;  %v1853_v39 = vor.u32 %v2095_v15, %v1850_v25  ;;  %955 = vmatpush.bf16.msrb.mxu0 %v1913_v34  ;;  %v1832_v10 = vld [vmem:[#allocation3 + $0x80] sm:$0xf]  ;;  %v1898_v15 = vld [vmem:[#allocation3 + $0xa8] sm:$0xf0]  ;;  %v1825_v25 = vor.u32 %v2090_v23, %v1824_v22 }
  0xc1   : > { %1004 = vmatpush.bf16.msrb.mxu1 %v1917_v43  ;;  %v1833_v13 = vor.u32 %v2092_v11, %v1832_v10  ;;  %v1901_v20 = vor.u32 %v2107_v14, %v1898_v15  ;;  %v2133_v43 = vld [vmem:[#allocation3 + $0x1d4] sm:$0xf]  ;;  %v2148_v10 = vld [vmem:[#allocation3 + $0x1b4] sm:$0xf0] }
  0xc2   : > { %1812 = vmatmul.msk.bf16.gmra.mxu2 %vm526_vm3, %v488_v19  ;;  %774 = vmatpush.bf16.msrb.mxu3 %v1853_v39  ;;  %v1978_v23 = vld [vmem:[#allocation3 + $0x130] sm:$0xf0] }
  0xc3   : > { %v461_v33 = vpop.f32.mrf.mxu3 }
  0xc4   : > { %v462_v50 = vadd.f32 %v2479_v18, %v461_v33  ;;  %v1816_v33 = vld [vmem:[#allocation3] sm:$0xf] }
  0xc5   : > { %v438_v41 = vpop.f32.mrf.mxu0  ;;  %1005 = vmatpush.bf16.msrb.mxu1 %v1909_v9  ;;  %v2056_v9 = vld [vmem:[#allocation3 + $0x198] sm:$0xf] }
  0xc6   : > { %v439_v42 = vadd.f32 %v2479_v18, %v438_v41  ;;  %v1842_v41 = vld [vmem:[#allocation3 + $0xe0] sm:$0xf0]  ;;  %v480_v57 = vmax.f32 %v462_v50, 0.0  ;;  %v2001_v50 = vor.u32 %v2134_v48, %v2000_v47  ;;  %v2057_v11 = vor.u32 %v2148_v10, %v2056_v9  ;;  %v2040_v47 = vld [vmem:[#allocation3 + $0x118] sm:$0xf] }
  0xc7   : > { %v2144_v48 = vld [vmem:[#allocation3 + $0x134] sm:$0xf0] }
  0xc8   : > { %v471_v45 = vmax.f32 %v439_v42, 0.0  ;;  %v1857_v42 = vor.u32 %v2098_v32, %v1856_v31  ;;  %v2087_v31 = vld [vmem:[#allocation3 + $0x4] sm:$0xf] }
  0xc9   : > { %1006 = vmatpush.bf16.msrb.mxu1 %v1901_v20  ;;  %v1818_v32 = vld [vmem:[#allocation3 + $0x20] sm:$0xf0]  ;;  %v2130_v20 = vld [vmem:[#allocation3 + $0x16c] sm:$0xf0] }
  0xca   : > { %v484_v46 = vpack.c.bf16 %v471_v45, %v470_v44  ;;  %v1904_v44 = vld [vmem:[#allocation3 + $0xc8] sm:$0xf]  ;;  %724 = vmatpush.bf16.msrb.mxu2 %v1857_v42  ;;  %v1821_v34 = vor.u32 %v2087_v31, %v1818_v32 }
  0xcb   : > { %v2110_v45 = vld [vmem:[#allocation3 + $0xe4] sm:$0xf0]  ;;  %v463_v56 = vpop.f32.mrf.mxu3 }
  0xcc   : > { %1808 = vmatmul.msk.bf16.gmra.mxu1 %vm526_vm3, %v484_v46  ;;  %v1905_v49 = vor.u32 %v2110_v45, %v1904_v44  ;;  %v464_v58 = vadd.f32 %v2479_v18, %v463_v56  ;;  %v2002_v44 = vld [vmem:[#allocation3 + $0x1f0] sm:$0xf0]  ;;  %v2065_v56 = vor.u32 %v2150_v55, %v2064_v54 }
  0xcd   : > { %v441_v51 = vpop.f32.mrf.mxu0  ;;  %1007 = vmatpush.bf16.msrb.mxu1 %v1893_v30  ;;  %v2005_v45 = vor.u32 %v2133_v43, %v2002_v44  ;;  %v2145_v43 = vld [vmem:[#allocation3 + $0x15c] sm:$0xf] }
  0xce   : > { %v442_v17 = vadd.f32 %v2479_v18, %v441_v51  ;;  %v1845_v51 = vor.u32 %v2093_v40, %v1842_v41  ;;  %956 = vmatpush.bf16.msrb.mxu0 %v1905_v49  ;;  %725 = vmatpush.bf16.msrb.mxu2 %v1849_v53  ;;  %v481_v60 = vmax.f32 %v464_v58, 0.0  ;;  %v2103_v40 = vld [vmem:[#allocation3 + $0xc] sm:$0xf]  ;;  %v2131_v49 = vld [vmem:[#allocation3 + $0x194] sm:$0xf] }
  0xcf   : > { %v1882_v41 = vld [vmem:[#allocation3 + $0x28] sm:$0xf0]  ;;  %v2508_v53 = vld [vmem:[%s2693_s4] ss:$0 sm:$0xff]  ;;  %v2050_v44 = vld [vmem:[#allocation3 + $0x178] sm:$0xf0] }
  0xd0   : > { %v472_v37 = vmax.f32 %v442_v17, 0.0  ;;  %775 = vmatpush.bf16.msrb.mxu3 %v1845_v51  ;;  %v489_v62 = vpack.c.bf16 %v481_v60, %v480_v57  ;;  %v1826_v17 = vld [vmem:[#allocation3 + $0x60] sm:$0xf0]  ;;  %v1885_v42 = vor.u32 %v2103_v40, %v1882_v41  ;;  %v1994_v51 = vld [vmem:[#allocation3 + $0x1b0] sm:$0xf0] }
  0xd1   : > { %v1829_v21 = vor.u32 %v2089_v16, %v1826_v17  ;;  %v2125_v40 = vld [vmem:[#allocation3 + $0xd4] sm:$0xf] }
  0xd2   : > { %1813 = vmatmul.msk.bf16.gmra.mxu2 %vm526_vm3, %v489_v62  ;;  %1008 = vmatpush.bf16.msrb.mxu1 %v1885_v42  ;;  %v1970_v42 = vld [vmem:[#allocation3 + $0xf0] sm:$0xf0] }
  0xd3   : > { %726 = vmatpush.bf16.msrb.mxu2 %v1841_v7  ;;  %v2066_v7 = vld [vmem:[#allocation3 + $0x1f8] sm:$0xf0] }
  0xd4   : > { %776 = vmatpush.bf16.msrb.mxu3 %v1837_v59  ;;  %v2518_v8 = vor.u32 %v2149_v6, %v2066_v7  ;;  %v2142_v6 = vld [vmem:[#allocation3 + $0xf4] sm:$0xf0] }
  0xd5   : > { %v443_v24 = vpop.f32.mrf.mxu0 }
  0xd6   : > { %v444_v29 = vadd.f32 %v2479_v18, %v443_v24  ;;  %v1888_v24 = vld [vmem:[#allocation3 + $0x48] sm:$0xf]  ;;  %1461 = vmatpush.bf16.msra.mxu1 %v2518_v8 }
  0xd7   : > { %727 = vmatpush.bf16.msrb.mxu2 %v1833_v13 }
  0xd8   : > { %v473_v38 = vmax.f32 %v444_v29, 0.0  ;;  %777 = vmatpush.bf16.msrb.mxu3 %v1829_v21  ;;  %v1889_v29 = vor.u32 %v2106_v26, %v1888_v24  ;;  %v2127_v21 = vld [vmem:[#allocation3 + $0x114] sm:$0xf]  ;;  %v2058_v26 = vld [vmem:[#allocation3 + $0x1b8] sm:$0xf0] }
  0xd9   : > { %v1981_v24 = vor.u32 %v2127_v21, %v1978_v23  ;;  %v1954_v21 = vld [vmem:[#allocation3 + $0x70] sm:$0xf0]  ;;  %v2034_v23 = vld [vmem:[#allocation3 + $0xf8] sm:$0xf0] }
  0xda   : > { %v485_v46 = vpack.c.bf16 %v473_v38, %v472_v37  ;;  %v2104_v37 = vld [vmem:[#allocation3 + $0x24] sm:$0xf0]  ;;  %v1817_v38 = vor.u32 %v2088_v35, %v1816_v33 }
  0xdb   : > { %728 = vmatpush.bf16.msrb.mxu2 %v1825_v25  ;;  %v1881_v39 = vor.u32 %v2104_v37, %v1880_v36  ;;  %v2147_v25 = vld [vmem:[#allocation3 + $0x19c] sm:$0xf] }
  0xdc   : > { %1809 = vmatmul.msk.bf16.gmra.mxu1 %vm526_vm3, %v485_v46  ;;  %778 = vmatpush.bf16.msrb.mxu3 %v1821_v34  ;;  %v2529_v27 = vor.u32 %v2147_v25, %v2058_v26  ;;  %v2024_v26 = vld [vmem:[#allocation3 + $0x98] sm:$0xf] }
  0xdd   : > { %v446_v52 = vpop.f32.mrf.mxu0 }
  0xde   : > { %v447_v61 = vadd.f32 %v2479_v18, %v446_v52  ;;  %v1997_v52 = vor.u32 %v2131_v49, %v1994_v51  ;;  %1462 = vmatpush.bf16.msra.mxu1 %v2529_v27  ;;  %v2041_v49 = vor.u32 %v2144_v48, %v2040_v47  ;;  %v2016_v48 = vld [vmem:[#allocation3 + $0x58] sm:$0xf] }
  0xdf   : > { %729 = vmatpush.bf16.msrb.mxu2 %v1817_v38  ;;  %v1976_v38 = vld [vmem:[#allocation3 + $0x110] sm:$0xf] }
  0xe0   : > { %v474_v1 = vmax.f32 %v447_v61, 0.0  ;;  %1231 = vmatpush.bf16.msra.mxu3 %v2005_v45  ;;  %v1973_v45 = vor.u32 %v2125_v40, %v1970_v42  ;;  %v2119_v40 = vld [vmem:[#allocation3 + $0x14] sm:$0xf] }
  0xe1   : > { %v1946_v42 = vld [vmem:[#allocation3 + $0x30] sm:$0xf0] }
  0xe3   : > { %1182 = vmatpush.bf16.msra.mxu2 %v2001_v50 }
  0xe4   : > { %1232 = vmatpush.bf16.msra.mxu3 %v1997_v52 }
  0xe5   : > { %v448_v63 = vpop.f32.mrf.mxu0 }
  0xe6   : > { %v449_v0 = vadd.f32 %v2479_v18, %v448_v63  ;;  %v2108_v18 = vld [vmem:[#allocation3 + $0xa4] sm:$0xf0] }
  0xe7   : > { %v1897_v19 = vor.u32 %v2108_v18, %v1896_v12 }
  0xe8   : > { %v475_v2 = vmax.f32 %v449_v0, 0.0  ;;  %v1992_v0 = vld [vmem:[#allocation3 + $0x190] sm:$0xf] }
  0xe9   : > { %957 = vmatpush.bf16.msrb.mxu0 %v1897_v19  ;;  %v1984_v19 = vld [vmem:[#allocation3 + $0x150] sm:$0xf] }
  0xea   : > { %v486_v3 = vpack.c.bf16 %v475_v2, %v474_v1  ;;  %v2132_v1 = vld [vmem:[#allocation3 + $0x1ac] sm:$0xf0]  ;;  %v2129_v2 = vld [vmem:[#allocation3 + $0x154] sm:$0xf]  ;;  %v1985_v22 = vor.u32 %v2130_v20, %v1984_v19 }
  0xeb   : > { %v1989_v5 = vor.u32 %v2129_v2, %v1986_v4  ;;  %v2042_v2 = vld [vmem:[#allocation3 + $0x138] sm:$0xf0]  ;;  %v2121_v19 = vld [vmem:[#allocation3 + $0x54] sm:$0xf] }
  0xec   : > { %1810 = vmatmul.msk.bf16.gmra.mxu1 %vm526_vm3, %v486_v3  ;;  %v1993_v3 = vor.u32 %v2132_v1, %v1992_v0  ;;  %v1962_v0 = vld [vmem:[#allocation3 + $0xb0] sm:$0xf0]  ;;  %v2143_v1 = vld [vmem:[#allocation3 + $0x11c] sm:$0xf] }
  0xed   : > { %958 = vmatpush.bf16.msrb.mxu0 %v1889_v29  ;;  %1233 = vmatpush.bf16.msra.mxu3 %v1989_v5  ;;  %v2146_v29 = vld [vmem:[#allocation3 + $0x174] sm:$0xf0]  ;;  %v2551_v4 = vor.u32 %v2143_v1, %v2042_v2 }
  0xee   : > { %1183 = vmatpush.bf16.msra.mxu2 %v1993_v3  ;;  %v2049_v30 = vor.u32 %v2146_v29, %v2048_v28  ;;  %v2032_v5 = vld [vmem:[#allocation3 + $0xd8] sm:$0xf] }
  0xef   : > { %v2033_v7 = vor.u32 %v2142_v6, %v2032_v5  ;;  %v2140_v28 = vld [vmem:[#allocation3 + $0xb4] sm:$0xf0]  ;;  %v2010_v5 = vld [vmem:[#allocation3 + $0x38] sm:$0xf0] }
  0xf0   : > { %v2025_v29 = vor.u32 %v2140_v28, %v2024_v26  ;;  %v2136_v2 = vld [vmem:[#allocation3 + $0x34] sm:$0xf0] }
  0xf1   : > { %959 = vmatpush.bf16.msrb.mxu0 %v1881_v39  ;;  %1234 = vmatpush.bf16.msra.mxu3 %v1981_v24  ;;  %v2128_v39 = vld [vmem:[#allocation3 + $0x12c] sm:$0xf0]  ;;  %v1957_v24 = vor.u32 %v2121_v19, %v1954_v21 }
  0xf2   : > { %1184 = vmatpush.bf16.msra.mxu2 %v1985_v22  ;;  %v1977_v41 = vor.u32 %v2128_v39, %v1976_v38  ;;  %v2141_v22 = vld [vmem:[#allocation3 + $0xdc] sm:$0xf]  ;;  %v1952_v38 = vld [vmem:[#allocation3 + $0x50] sm:$0xf] }
  0xf3   : > { %v2562_v25 = vor.u32 %v2141_v22, %v2034_v23  ;;  %v2122_v39 = vld [vmem:[#allocation3 + $0x6c] sm:$0xf0] }
  0xf5   : > { %1412 = vmatpush.bf16.msra.mxu0 %v2065_v56  ;;  %1235 = vmatpush.bf16.msra.mxu3 %v1973_v45  ;;  %v1949_v45 = vor.u32 %v2119_v40, %v1946_v42 }
  0xf6   : > { %1185 = vmatpush.bf16.msra.mxu2 %v1977_v41  ;;  %v1953_v41 = vor.u32 %v2122_v39, %v1952_v38 }
  0xf9   : > { %1413 = vmatpush.bf16.msra.mxu0 %v2057_v11 }
  0xfd   : > { %1414 = vmatpush.bf16.msra.mxu0 %v2049_v30 }
 0x101   : > { %1415 = vmatpush.bf16.msra.mxu0 %v2041_v49  ;;  %v2138_v49 = vld [vmem:[#allocation3 + $0x74] sm:$0xf0] }
 0x105   : > { %1416 = vmatpush.bf16.msra.mxu0 %v2033_v7 }
 0x109   : > { %1417 = vmatpush.bf16.msra.mxu0 %v2025_v29 }
 0x129   : > { %v560_v46 = vpop.f32.mrf.mxu1 }
 0x12a   : > { %v561_v57 = vadd.f32 %v2508_v53, %v560_v46  ;;  %v2540_v46 = vor.u32 %v2145_v43, %v2050_v44  ;;  %v2139_v43 = vld [vmem:[#allocation3 + $0x9c] sm:$0xf] }
 0x12b   : > { %v2026_v44 = vld [vmem:[#allocation3 + $0xb8] sm:$0xf0] }
 0x12c   : > { %v600_v60 = vmax.f32 %v561_v57, 0.0  ;;  %1463 = vmatpush.bf16.msra.mxu1 %v2540_v46  ;;  %v2029_v47 = vor.u32 %v2139_v43, %v2026_v44 }
 0x130   : > { %1464 = vmatpush.bf16.msra.mxu1 %v2551_v4 }
 0x131   : > { %v562_v58 = vpop.f32.mrf.mxu1 }
 0x132   : > { %v563_v59 = vadd.f32 %v2508_v53, %v562_v58 }
 0x134   : > { %v601_v61 = vmax.f32 %v563_v59, 0.0  ;;  %v1968_v59 = vld [vmem:[#allocation3 + $0xd0] sm:$0xf]  ;;  %1465 = vmatpush.bf16.msra.mxu1 %v2562_v25 }
 0x135   : > { %v585_v58 = vpop.f32.mrf.mxu2 }
 0x136   : > { %v2512_v62 = vpack.c.bf16 %v601_v61, %v600_v60  ;;  %v2126_v60 = vld [vmem:[#allocation3 + $0xec] sm:$0xf0]  ;;  %v2123_v61 = vld [vmem:[#allocation3 + $0x94] sm:$0xf] }
 0x137   : > { %v1965_v3 = vor.u32 %v2123_v61, %v1962_v0  ;;  %v1944_v61 = vld [vmem:[#allocation3 + $0x10] sm:$0xf]  ;;  %v2008_v0 = vld [vmem:[#allocation3 + $0x18] sm:$0xf] }
 0x138   : > { %730 = vmatmul.bf16.vlgmr.msrb.gmra.mxu2 %v2512_v62  ;;  %779 = vmatmul.bf16.vlgmr.msrb.gmra.mxu3 %v2512_v62  ;;  %v2009_v6 = vor.u32 %v2136_v2, %v2008_v0 }
 0x139   : > { %960 = vmatmul.bf16.vlgmr.msrb.gmra.mxu0 %v2512_v62  ;;  %1009 = vmatmul.bf16.vlgmr.msrb.gmra.mxu1 %v2512_v62  ;;  %v565_v63 = vpop.f32.mrf.mxu1 }
 0x13a   : > { %v566_v12 = vadd.f32 %v2508_v53, %v565_v63  ;;  %v1969_v63 = vor.u32 %v2126_v60, %v1968_v59  ;;  %1236 = vmatpush.bf16.msra.mxu3 %v1965_v3  ;;  %1466 = vmatpush.bf16.msra.mxu1 %v2029_v47  ;;  %v2135_v3 = vld [vmem:[#allocation3 + $0x1c] sm:$0xf] }
 0x13b   : > { %v2013_v7 = vor.u32 %v2135_v3, %v2010_v5 }
 0x13c   : > { %v602_v14 = vmax.f32 %v566_v12, 0.0  ;;  %1186 = vmatpush.bf16.msra.mxu2 %v1969_v63  ;;  %v2120_v63 = vld [vmem:[#allocation3 + $0x2c] sm:$0xf0] }
 0x13d   : > { %v587_v12 = vpop.f32.mrf.mxu2  ;;  %v1945_v1 = vor.u32 %v2120_v63, %v1944_v61 }
 0x13e   : > { %1237 = vmatpush.bf16.msra.mxu3 %v1957_v24 }
 0x141   : > { %v567_v13 = vpop.f32.mrf.mxu1 }
 0x142   : > { %v568_v18 = vadd.f32 %v2508_v53, %v567_v13  ;;  %1238 = vmatpush.bf16.msra.mxu3 %v1949_v45 }
 0x144   : > { %v603_v15 = vmax.f32 %v568_v18, 0.0 }
 0x145   : > { %v590_v30 = vpop.f32.mrf.mxu2 }
 0x146   : > { %v2523_v16 = vpack.c.bf16 %v603_v15, %v602_v14  ;;  %v1960_v15 = vld [vmem:[#allocation3 + $0x90] sm:$0xf]  ;;  %2156 = vmatpush.bf16.msrb.mxu3 %v2518_v8 }
 0x148   : > { %735 = vmatmul.bf16.gmra.mxu2 %v2523_v16  ;;  %784 = vmatmul.bf16.gmra.mxu3 %v2523_v16 }
 0x149   : > { %965 = vmatmul.bf16.gmra.mxu0 %v2523_v16  ;;  %1014 = vmatmul.bf16.gmra.mxu1 %v2523_v16  ;;  %v570_v17 = vpop.f32.mrf.mxu1 }
 0x14a   : > { %v571_v31 = vadd.f32 %v2508_v53, %v570_v17  ;;  %v2124_v17 = vld [vmem:[#allocation3 + $0xac] sm:$0xf0]  ;;  %2157 = vmatpush.bf16.msrb.mxu3 %v2529_v27 }
 0x14b   : > { %v1961_v20 = vor.u32 %v2124_v17, %v1960_v15 }
 0x14c   : > { %v604_v34 = vmax.f32 %v571_v31, 0.0  ;;  %v586_v31 = vadd.f32 %v2508_v53, %v585_v58 }
 0x14d   : > { %1187 = vmatpush.bf16.msra.mxu2 %v1961_v20 }
 0x14e   : > { %2158 = vmatpush.bf16.msrb.mxu3 %v2540_v46 }
 0x151   : > { %v572_v32 = vpop.f32.mrf.mxu1  ;;  %1188 = vmatpush.bf16.msra.mxu2 %v1953_v41 }
 0x152   : > { %v573_v33 = vadd.f32 %v2508_v53, %v572_v32  ;;  %v588_v32 = vadd.f32 %v2508_v53, %v587_v12  ;;  %2159 = vmatpush.bf16.msrb.mxu3 %v2551_v4 }
 0x154   : > { %v605_v35 = vmax.f32 %v573_v33, 0.0  ;;  %v610_v33 = vmax.f32 %v586_v31, 0.0 }
 0x155   : > { %1189 = vmatpush.bf16.msra.mxu2 %v1945_v1 }
 0x156   : > { %v2534_v36 = vpack.c.bf16 %v605_v35, %v604_v34  ;;  %v611_v34 = vmax.f32 %v588_v32, 0.0  ;;  %2160 = vmatpush.bf16.msrb.mxu3 %v2562_v25 }
 0x158   : > { %740 = vmatmul.bf16.gmra.mxu2 %v2534_v36  ;;  %789 = vmatmul.bf16.gmra.mxu3 %v2534_v36  ;;  %v2567_v35 = vpack.c.bf16 %v611_v34, %v610_v33 }
 0x159   : > { %970 = vmatmul.bf16.gmra.mxu0 %v2534_v36  ;;  %1019 = vmatmul.bf16.gmra.mxu1 %v2534_v36  ;;  %v575_v37 = vpop.f32.mrf.mxu1 }
 0x15a   : > { %v576_v50 = vadd.f32 %v2508_v53, %v575_v37  ;;  %v592_v37 = vpop.f32.mrf.mxu2  ;;  %2161 = vmatpush.bf16.msrb.mxu3 %v2029_v47 }
 0x15c   : > { %v606_v54 = vmax.f32 %v576_v50, 0.0  ;;  %v2137_v50 = vld [vmem:[#allocation3 + $0x5c] sm:$0xf] }
 0x161   : > { %v577_v51 = vpop.f32.mrf.mxu1 }
 0x162   : > { %v578_v52 = vadd.f32 %v2508_v53, %v577_v51  ;;  %v2017_v51 = vor.u32 %v2138_v49, %v2016_v48  ;;  %v595_v58 = vpop.f32.mrf.mxu2 }
 0x163   : > { %v596_v27 = vadd.f32 %v2508_v53, %v595_v58 }
 0x164   : > { %v607_v55 = vmax.f32 %v578_v52, 0.0  ;;  %v2018_v52 = vld [vmem:[#allocation3 + $0x78] sm:$0xf0]  ;;  %1418 = vmatpush.bf16.msra.mxu0 %v2017_v51 }
 0x165   : > { %v614_v46 = vmax.f32 %v596_v27, 0.0 }
 0x166   : > { %v2545_v56 = vpack.c.bf16 %v607_v55, %v606_v54  ;;  %v2021_v54 = vor.u32 %v2137_v50, %v2018_v52  ;;  %v591_v55 = vadd.f32 %v2508_v53, %v590_v30 }
 0x168   : > { %745 = vmatmul.bf16.gmra.mxu2 %v2545_v56  ;;  %794 = vmatmul.bf16.gmra.mxu3 %v2545_v56  ;;  %v612_v59 = vmax.f32 %v591_v55, 0.0 }
 0x169   : > { %975 = vmatmul.bf16.gmra.mxu0 %v2545_v56  ;;  %1024 = vmatmul.bf16.gmra.mxu1 %v2545_v56  ;;  %v580_v57 = vpop.f32.mrf.mxu1 }
 0x16a   : > { %v581_v9 = vadd.f32 %v2508_v53, %v580_v57  ;;  %v593_v57 = vadd.f32 %v2508_v53, %v592_v37  ;;  %1467 = vmatpush.bf16.msra.mxu1 %v2021_v54  ;;  %1419 = vmatpush.bf16.msra.mxu0 %v2009_v6  ;;  %v597_v8 = vpop.f32.mrf.mxu2 }
 0x16b   : > { %2162 = vmatpush.bf16.msrb.mxu3 %v2021_v54 }
 0x16c   : > { %v608_v13 = vmax.f32 %v581_v9, 0.0  ;;  %v613_v60 = vmax.f32 %v593_v57, 0.0 }
 0x16e   : > { %v2577_v9 = vpack.c.bf16 %v613_v60, %v612_v59  ;;  %1468 = vmatpush.bf16.msra.mxu1 %v2013_v7 }
 0x16f   : > { %2163 = vmatpush.bf16.msrb.mxu3 %v2013_v7 }
 0x171   : > { %v582_v10 = vpop.f32.mrf.mxu1 }
 0x172   : > { %v583_v11 = vadd.f32 %v2508_v53, %v582_v10  ;;  %v598_v10 = vadd.f32 %v2508_v53, %v597_v8 }
 0x174   : > { %v609_v18 = vmax.f32 %v583_v11, 0.0  ;;  %v615_v11 = vmax.f32 %v598_v10, 0.0 }
 0x176   : > { %v2556_v14 = vpack.c.bf16 %v609_v18, %v608_v13  ;;  %v2588_v12 = vpack.c.bf16 %v615_v11, %v614_v46 }
 0x178   : > { %750 = vmatmul.bf16.gmra.mxu2 %v2556_v14  ;;  %799 = vmatmul.bf16.gmra.mxu3 %v2556_v14 }
 0x179   : > { %980 = vmatmul.bf16.gmra.mxu0 %v2556_v14  ;;  %1029 = vmatmul.bf16.gmra.mxu1 %v2556_v14 }
 0x188   : > { %755 = vmatmul.bf16.gmra.mxu2 %v2567_v35  ;;  %804 = vmatmul.bf16.gmra.mxu3 %v2567_v35 }
 0x189   : > { %985 = vmatmul.bf16.gmra.mxu0 %v2567_v35  ;;  %1034 = vmatmul.bf16.gmra.mxu1 %v2567_v35 }
 0x198   : > { %760 = vmatmul.bf16.gmra.mxu2 %v2577_v9  ;;  %809 = vmatmul.bf16.gmra.mxu3 %v2577_v9 }
 0x199   : > { %990 = vmatmul.bf16.gmra.mxu0 %v2577_v9  ;;  %1039 = vmatmul.bf16.gmra.mxu1 %v2577_v9 }
 0x1a8   : > { %765 = vmatmul.bf16.gmra.mxu2 %v2588_v12  ;;  %814 = vmatmul.bf16.gmra.mxu3 %v2588_v12 }
 0x1a9   : > { %995 = vmatmul.bf16.gmra.mxu0 %v2588_v12  ;;  %1044 = vmatmul.bf16.gmra.mxu1 %v2588_v12 }
 0x1b6   : > { %v961_v4 = vpop.f32.mrf.mxu0  ;;  %v1010_v13 = vpop.f32.mrf.mxu1 }
 0x1b8   : > { %1190 = vmatmul.bf16.vlgmr.msra.gmra.mxu2 %v2512_v62  ;;  %1239 = vmatmul.bf16.vlgmr.msra.gmra.mxu3 %v2512_v62 }
 0x1b9   : > { %1420 = vmatmul.bf16.vlgmr.msra.gmra.mxu0 %v2512_v62  ;;  %1469 = vmatmul.bf16.vlgmr.msra.gmra.mxu1 %v2512_v62 }
 0x1bb   : > { %v731_v53 = vpop.f32.mrf.mxu2  ;;  %v780_v18 = vpop.f32.mrf.mxu3 }
 0x1be   : > { %v963_v15 = vpop.f32.mrf.mxu0  ;;  %v1012_v17 = vpop.f32.mrf.mxu1 }
 0x1c3   : > { %v733_v19 = vpop.f32.mrf.mxu2  ;;  %v782_v20 = vpop.f32.mrf.mxu3 }
 0x1c6   : > { %v966_v21 = vpop.f32.mrf.mxu0  ;;  %v1015_v22 = vpop.f32.mrf.mxu1 }
 0x1c7   : > { %v1050_v23 = vmax.f32 %v961_v4, %v966_v21  ;;  %v1065_v24 = vmax.f32 %v1010_v13, %v1015_v22 }
 0x1c8   : > { %1195 = vmatmul.bf16.gmra.mxu2 %v2523_v16  ;;  %1244 = vmatmul.bf16.gmra.mxu3 %v2523_v16 }
 0x1c9   : > { %1425 = vmatmul.bf16.gmra.mxu0 %v2523_v16  ;;  %1474 = vmatmul.bf16.gmra.mxu1 %v2523_v16 }
 0x1cb   : > { %v736_v25 = vpop.f32.mrf.mxu2  ;;  %v785_v62 = vpop.f32.mrf.mxu3 }
 0x1cc   : > { %v820_v26 = vmax.f32 %v731_v53, %v736_v25  ;;  %v835_v28 = vmax.f32 %v780_v18, %v785_v62 }
 0x1ce   : > { %v968_v29 = vpop.f32.mrf.mxu0  ;;  %v1017_v30 = vpop.f32.mrf.mxu1 }
 0x1cf   : > { %v1051_v31 = vmax.f32 %v963_v15, %v968_v29  ;;  %v1066_v32 = vmax.f32 %v1012_v17, %v1017_v30 }
 0x1d3   : > { %v738_v33 = vpop.f32.mrf.mxu2  ;;  %v787_v34 = vpop.f32.mrf.mxu3 }
 0x1d4   : > { %v821_v37 = vmax.f32 %v733_v19, %v738_v33  ;;  %v836_v38 = vmax.f32 %v782_v20, %v787_v34 }
 0x1d6   : > { %v971_v39 = vpop.f32.mrf.mxu0  ;;  %v1020_v40 = vpop.f32.mrf.mxu1 }
 0x1d7   : > { %v1052_v41 = vmax.f32 %v1050_v23, %v971_v39  ;;  %v1067_v42 = vmax.f32 %v1065_v24, %v1020_v40 }
 0x1d8   : > { %1200 = vmatmul.bf16.gmra.mxu2 %v2534_v36  ;;  %1249 = vmatmul.bf16.gmra.mxu3 %v2534_v36 }
 0x1d9   : > { %1430 = vmatmul.bf16.gmra.mxu0 %v2534_v36  ;;  %1479 = vmatmul.bf16.gmra.mxu1 %v2534_v36 }
 0x1db   : > { %v741_v16 = vpop.f32.mrf.mxu2  ;;  %v790_v43 = vpop.f32.mrf.mxu3 }
 0x1dc   : > { %v822_v44 = vmax.f32 %v820_v26, %v741_v16  ;;  %v837_v45 = vmax.f32 %v835_v28, %v790_v43 }
 0x1de   : > { %v973_v47 = vpop.f32.mrf.mxu0  ;;  %v1022_v48 = vpop.f32.mrf.mxu1 }
 0x1df   : > { %v1053_v49 = vmax.f32 %v1051_v31, %v973_v47  ;;  %v1068_v50 = vmax.f32 %v1066_v32, %v1022_v48 }
 0x1e3   : > { %v743_v51 = vpop.f32.mrf.mxu2  ;;  %v792_v52 = vpop.f32.mrf.mxu3 }
 0x1e4   : > { %v823_v54 = vmax.f32 %v821_v37, %v743_v51  ;;  %v838_v55 = vmax.f32 %v836_v38, %v792_v52 }
 0x1e6   : > { %v976_v57 = vpop.f32.mrf.mxu0  ;;  %v1025_v58 = vpop.f32.mrf.mxu1 }
 0x1e7   : > { %v1054_v59 = vmax.f32 %v1052_v41, %v976_v57  ;;  %v1069_v60 = vmax.f32 %v1067_v42, %v1025_v58 }
 0x1e8   : > { %1205 = vmatmul.bf16.gmra.mxu2 %v2545_v56  ;;  %1254 = vmatmul.bf16.gmra.mxu3 %v2545_v56 }
 0x1e9   : > { %1435 = vmatmul.bf16.gmra.mxu0 %v2545_v56  ;;  %1484 = vmatmul.bf16.gmra.mxu1 %v2545_v56 }
 0x1eb   : > { %v746_v36 = vpop.f32.mrf.mxu2  ;;  %v795_v61 = vpop.f32.mrf.mxu3 }
 0x1ec   : > { %v824_v63 = vmax.f32 %v822_v44, %v746_v36  ;;  %v839_v0 = vmax.f32 %v837_v45, %v795_v61 }
 0x1ee   : > { %v978_v1 = vpop.f32.mrf.mxu0  ;;  %v1027_v2 = vpop.f32.mrf.mxu1 }
 0x1ef   : > { %v1055_v3 = vmax.f32 %v1053_v49, %v978_v1  ;;  %v1070_v5 = vmax.f32 %v1068_v50, %v1027_v2 }
 0x1f3   : > { %v748_v6 = vpop.f32.mrf.mxu2  ;;  %v797_v7 = vpop.f32.mrf.mxu3 }
 0x1f4   : > { %v825_v8 = vmax.f32 %v823_v54, %v748_v6  ;;  %v840_v27 = vmax.f32 %v838_v55, %v797_v7 }
 0x1f6   : > { %v981_v10 = vpop.f32.mrf.mxu0  ;;  %v1030_v46 = vpop.f32.mrf.mxu1 }
 0x1f7   : > { %v1056_v11 = vmax.f32 %v1054_v59, %v981_v10  ;;  %v1071_v4 = vmax.f32 %v1069_v60, %v1030_v46 }
 0x1f8   : > { %1210 = vmatmul.bf16.gmra.mxu2 %v2556_v14  ;;  %1259 = vmatmul.bf16.gmra.mxu3 %v2556_v14 }
 0x1f9   : > { %1440 = vmatmul.bf16.gmra.mxu0 %v2556_v14  ;;  %1489 = vmatmul.bf16.gmra.mxu1 %v2556_v14 }
 0x1fb   : > { %v751_v56 = vpop.f32.mrf.mxu2  ;;  %v800_v13 = vpop.f32.mrf.mxu3 }
 0x1fc   : > { %v826_v53 = vmax.f32 %v824_v63, %v751_v56  ;;  %v841_v18 = vmax.f32 %v839_v0, %v800_v13 }
 0x1fe   : > { %v983_v15 = vpop.f32.mrf.mxu0  ;;  %v1032_v17 = vpop.f32.mrf.mxu1 }
 0x1ff   : > { %v1057_v19 = vmax.f32 %v1055_v3, %v983_v15  ;;  %v1072_v20 = vmax.f32 %v1070_v5, %v1032_v17 }
 0x203   : > { %v753_v21 = vpop.f32.mrf.mxu2  ;;  %v802_v22 = vpop.f32.mrf.mxu3 }
 0x204   : > { %v827_v23 = vmax.f32 %v825_v8, %v753_v21  ;;  %v842_v24 = vmax.f32 %v840_v27, %v802_v22 }
 0x206   : > { %v986_v25 = vpop.f32.mrf.mxu0  ;;  %v1035_v62 = vpop.f32.mrf.mxu1 }
 0x207   : > { %v1058_v26 = vmax.f32 %v1056_v11, %v986_v25  ;;  %v1073_v28 = vmax.f32 %v1071_v4, %v1035_v62 }
 0x208   : > { %1215 = vmatmul.bf16.gmra.mxu2 %v2567_v35  ;;  %1264 = vmatmul.bf16.gmra.mxu3 %v2567_v35 }
 0x209   : > { %1445 = vmatmul.bf16.gmra.mxu0 %v2567_v35  ;;  %1494 = vmatmul.bf16.gmra.mxu1 %v2567_v35 }
 0x20b   : > { %v756_v14 = vpop.f32.mrf.mxu2  ;;  %v805_v29 = vpop.f32.mrf.mxu3 }
 0x20c   : > { %v828_v30 = vmax.f32 %v826_v53, %v756_v14  ;;  %v843_v31 = vmax.f32 %v841_v18, %v805_v29 }
 0x20e   : > { %v988_v32 = vpop.f32.mrf.mxu0  ;;  %v1037_v33 = vpop.f32.mrf.mxu1 }
 0x20f   : > { %v1059_v34 = vmax.f32 %v1057_v19, %v988_v32  ;;  %v1074_v37 = vmax.f32 %v1072_v20, %v1037_v33 }
 0x213   : > { %v758_v38 = vpop.f32.mrf.mxu2  ;;  %v807_v39 = vpop.f32.mrf.mxu3 }
 0x214   : > { %v829_v40 = vmax.f32 %v827_v23, %v758_v38  ;;  %v844_v41 = vmax.f32 %v842_v24, %v807_v39 }
 0x216   : > { %v991_v42 = vpop.f32.mrf.mxu0  ;;  %v1040_v16 = vpop.f32.mrf.mxu1 }
 0x217   : > { %v1060_v43 = vmax.f32 %v1058_v26, %v991_v42  ;;  %v1075_v44 = vmax.f32 %v1073_v28, %v1040_v16 }
 0x218   : > { %1220 = vmatmul.bf16.gmra.mxu2 %v2577_v9  ;;  %1269 = vmatmul.bf16.gmra.mxu3 %v2577_v9 }
 0x219   : > { %1450 = vmatmul.bf16.gmra.mxu0 %v2577_v9  ;;  %1499 = vmatmul.bf16.gmra.mxu1 %v2577_v9 }
 0x21b   : > { %v761_v35 = vpop.f32.mrf.mxu2  ;;  %v810_v45 = vpop.f32.mrf.mxu3 }
 0x21c   : > { %v830_v47 = vmax.f32 %v828_v30, %v761_v35  ;;  %v845_v48 = vmax.f32 %v843_v31, %v810_v45 }
 0x21e   : > { %v993_v49 = vpop.f32.mrf.mxu0  ;;  %v1042_v50 = vpop.f32.mrf.mxu1 }
 0x21f   : > { %v1061_v51 = vmax.f32 %v1059_v34, %v993_v49  ;;  %v1076_v52 = vmax.f32 %v1074_v37, %v1042_v50 }
 0x223   : > { %v763_v54 = vpop.f32.mrf.mxu2  ;;  %v812_v55 = vpop.f32.mrf.mxu3 }
 0x224   : > { %v831_v57 = vmax.f32 %v829_v40, %v763_v54  ;;  %v846_v58 = vmax.f32 %v844_v41, %v812_v55 }
 0x226   : > { %v996_v59 = vpop.f32.mrf.mxu0  ;;  %v1045_v60 = vpop.f32.mrf.mxu1 }
 0x227   : > { %v1062_v36 = vmax.f32 %v1060_v43, %v996_v59  ;;  %v1077_v61 = vmax.f32 %v1075_v44, %v1045_v60 }
 0x228   : > { %1225 = vmatmul.bf16.gmra.mxu2 %v2588_v12  ;;  %1274 = vmatmul.bf16.gmra.mxu3 %v2588_v12 }
 0x229   : > { %1455 = vmatmul.bf16.gmra.mxu0 %v2588_v12 }
 0x22b   : > { %v766_v9 = vpop.f32.mrf.mxu2  ;;  %v815_v63 = vpop.f32.mrf.mxu3 }
 0x22c   : > { %v832_v0 = vmax.f32 %v830_v47, %v766_v9  ;;  %v847_v1 = vmax.f32 %v845_v48, %v815_v63 }
 0x22e   : > { %v998_v2 = vpop.f32.mrf.mxu0  ;;  %v1047_v3 = vpop.f32.mrf.mxu1 }
 0x22f   : > { %v1063_v5 = vmax.f32 %v1061_v51, %v998_v2  ;;  %v1078_v6 = vmax.f32 %v1076_v52, %v1047_v3 }
 0x231   : > { %v1064_v7 = vmax.f32 %v1062_v36, %v1063_v5  ;;  %v1079_v8 = vmax.f32 %v1077_v61, %v1078_v6 }
 0x233   : > { %v1567_v27 = vrot.slane %v1064_v7, 4  ;;  %v1573_v10 = vrot.slane %v1079_v8, 4  ;;  %v768_v46 = vpop.f32.mrf.mxu2  ;;  %v817_v11 = vpop.f32.mrf.mxu3 }
 0x234   : > { %v833_v4 = vmax.f32 %v831_v57, %v768_v46  ;;  %v848_v56 = vmax.f32 %v846_v58, %v817_v11 }
 0x235   : > { %v1568_v13 = vmax.f32 %v1064_v7, %v1567_v27  ;;  %v1574_v53 = vmax.f32 %v1079_v8, %v1573_v10 }
 0x236   : > { %v834_v18 = vmax.f32 %v832_v0, %v833_v4  ;;  %v849_v15 = vmax.f32 %v847_v1, %v848_v56  ;;  %v1421_v17 = vpop.f32.mrf.mxu0  ;;  %v1470_v19 = vpop.f32.mrf.mxu1 }
 0x237   : > { %v1569_v20 = vrot.slane %v1568_v13, 2  ;;  %v1575_v21 = vrot.slane %v1574_v53, 2 }
 0x238   : > { %v1555_v22 = vrot.slane %v834_v18, 4  ;;  %v1561_v23 = vrot.slane %v849_v15, 4  ;;  %1504 = vmatmul.bf16.vlgmr.msrb.gmra.mxu3 %v2588_v12 }
 0x239   : > { %v1570_v24 = vmax.f32 %v1568_v13, %v1569_v20  ;;  %v1576_v25 = vmax.f32 %v1574_v53, %v1575_v21 }
 0x23a   : > { %v1556_v62 = vmax.f32 %v834_v18, %v1555_v22  ;;  %v1562_v26 = vmax.f32 %v849_v15, %v1561_v23 }
 0x23b   : > { %v1571_v28 = vrot.slane %v1570_v24, 1  ;;  %v1577_v14 = vrot.slane %v1576_v25, 1  ;;  %v1191_v29 = vpop.f32.mrf.mxu2  ;;  %v1240_v30 = vpop.f32.mrf.mxu3 }
 0x23c   : > { %v1557_v31 = vrot.slane %v1556_v62, 2  ;;  %v1563_v32 = vrot.slane %v1562_v26, 2 }
 0x23d   : > { %v1572_v33 = vmax.f32 %v1570_v24, %v1571_v28  ;;  %v1578_v34 = vmax.f32 %v1576_v25, %v1577_v14 }
 0x23e   : > { %v1558_v37 = vmax.f32 %v1556_v62, %v1557_v31  ;;  %v1564_v38 = vmax.f32 %v1562_v26, %v1563_v32  ;;  %v1423_v39 = vpop.f32.mrf.mxu0  ;;  %v2626_v40 = vpop.f32.mrf.mxu1 }
 0x23f   : > { %v1612_v41 = vrot.slane %v1572_v33, 6  ;;  %v1613_v12 = vrot.slane %v1578_v34, 5 }
 0x240   : > { %v1559_v42 = vrot.slane %v1558_v37, 1  ;;  %v1565_v16 = vrot.slane %v1564_v38, 1 }
 0x241   : > { %v1620_v43 = vsel %vm1619_vm4, %v1612_v41, %v1613_v12 }
 0x242   : > { %v1566_v44 = vmax.f32 %v1564_v38, %v1565_v16  ;;  %v1560_v47 = vmax.f32 %v1558_v37, %v1559_v42 }
 0x243   : > { %v1193_v35 = vpop.f32.mrf.mxu2  ;;  %v1242_v45 = vpop.f32.mrf.mxu3 }
 0x244   : > { %v1611_v48 = vrot.slane %v1566_v44, 7 }
 0x246   : > { %v1426_v49 = vpop.f32.mrf.mxu0  ;;  %v1475_v50 = vpop.f32.mrf.mxu1  ;;  %v1618_v51 = vsel %vm410_vm0, %v1560_v47, %v1611_v48 }
 0x247   : > { %v1510_v52 = vmax.f32 %v1421_v17, %v1426_v49  ;;  %v1525_v54 = vmax.f32 %v1470_v19, %v1475_v50  ;;  %v2630_v55 = vsel %vm411_vm1, %v1618_v51, %v1620_v43 }
 0x24b   : > { %v1196_v57 = vpop.f32.mrf.mxu2  ;;  %v1245_v58 = vpop.f32.mrf.mxu3 }
 0x24c   : > { %v1280_v59 = vmax.f32 %v1191_v29, %v1196_v57  ;;  %v1295_v60 = vmax.f32 %v1240_v30, %v1245_v58 }
 0x24e   : > { %v1428_v36 = vpop.f32.mrf.mxu0  ;;  %v2632_v61 = vpop.f32.mrf.mxu1 }
 0x24f   : > { %v1511_v9 = vmax.f32 %v1423_v39, %v1428_v36  ;;  %v1526_v63 = vmax.f32 %v2626_v40, %v2632_v61 }
 0x253   : > { %v1198_v0 = vpop.f32.mrf.mxu2  ;;  %v1247_v1 = vpop.f32.mrf.mxu3 }
 0x254   : > { %v1281_v2 = vmax.f32 %v1193_v35, %v1198_v0  ;;  %v1296_v3 = vmax.f32 %v1242_v45, %v1247_v1 }
 0x256   : > { %v1431_v5 = vpop.f32.mrf.mxu0  ;;  %v1480_v6 = vpop.f32.mrf.mxu1 }
 0x257   : > { %v1512_v7 = vmax.f32 %v1510_v52, %v1431_v5  ;;  %v2636_v8 = vmax.f32 %v1525_v54, %v1480_v6 }
 0x25b   : > { %v1201_v27 = vpop.f32.mrf.mxu2  ;;  %v1250_v10 = vpop.f32.mrf.mxu3 }
 0x25c   : > { %v1282_v46 = vmax.f32 %v1280_v59, %v1201_v27  ;;  %v1297_v11 = vmax.f32 %v1295_v60, %v1250_v10 }
 0x25e   : > { %v1433_v4 = vpop.f32.mrf.mxu0  ;;  %v2638_v24 = vpop.f32.mrf.mxu1 }
 0x25f   : > { %v1513_v56 = vmax.f32 %v1511_v9, %v1433_v4 }
 0x263   : > { %v1203_v13 = vpop.f32.mrf.mxu2  ;;  %v1252_v53 = vpop.f32.mrf.mxu3 }
 0x264   : > { %v1283_v18 = vmax.f32 %v1281_v2, %v1203_v13  ;;  %v1298_v15 = vmax.f32 %v1296_v3, %v1252_v53 }
 0x266   : > { %v1436_v17 = vpop.f32.mrf.mxu0  ;;  %v2640_v29 = vpop.f32.mrf.mxu1 }
 0x267   : > { %v1514_v19 = vmax.f32 %v1512_v7, %v1436_v17 }
 0x26b   : > { %v1206_v20 = vpop.f32.mrf.mxu2  ;;  %v1255_v21 = vpop.f32.mrf.mxu3 }
 0x26c   : > { %v1284_v22 = vmax.f32 %v1282_v46, %v1206_v20  ;;  %v1299_v23 = vmax.f32 %v1297_v11, %v1255_v21 }
 0x26e   : > { %v1438_v25 = vpop.f32.mrf.mxu0  ;;  %v2642_v34 = vpop.f32.mrf.mxu1 }
 0x26f   : > { %v1515_v57 = vmax.f32 %v1513_v56, %v1438_v25 }
 0x273   : > { %v1208_v62 = vpop.f32.mrf.mxu2  ;;  %v1257_v26 = vpop.f32.mrf.mxu3 }
 0x274   : > { %v1300_v28 = vmax.f32 %v1298_v15, %v1257_v26  ;;  %v1285_v2 = vmax.f32 %v1283_v18, %v1208_v62 }
 0x276   : > { %v1441_v14 = vpop.f32.mrf.mxu0  ;;  %v1490_v42 = vpop.f32.mrf.mxu1 }
 0x277   : > { %v1516_v58 = vmax.f32 %v1514_v19, %v1441_v14 }
 0x27b   : > { %v1211_v30 = vpop.f32.mrf.mxu2  ;;  %v1260_v31 = vpop.f32.mrf.mxu3 }
 0x27c   : > { %v1301_v32 = vmax.f32 %v1299_v23, %v1260_v31  ;;  %v1286_v6 = vmax.f32 %v1284_v22, %v1211_v30 }
 0x27e   : > { %v1443_v33 = vpop.f32.mrf.mxu0  ;;  %v1492_v35 = vpop.f32.mrf.mxu1 }
 0x27f   : > { %v1517_v59 = vmax.f32 %v1515_v57, %v1443_v33 }
 0x283   : > { %v1213_v37 = vpop.f32.mrf.mxu2  ;;  %v1262_v38 = vpop.f32.mrf.mxu3 }
 0x284   : > { %v1287_v7 = vmax.f32 %v1285_v2, %v1213_v37  ;;  %v1302_v27 = vmax.f32 %v1300_v28, %v1262_v38 }
 0x286   : > { %v1446_v39 = vpop.f32.mrf.mxu0  ;;  %v1495_v50 = vpop.f32.mrf.mxu1 }
 0x287   : > { %v1518_v36 = vmax.f32 %v1516_v58, %v1446_v39 }
 0x28b   : > { %v1216_v41 = vpop.f32.mrf.mxu2  ;;  %v1265_v12 = vpop.f32.mrf.mxu3 }
 0x28c   : > { %v1288_v4 = vmax.f32 %v1286_v6, %v1216_v41  ;;  %v1303_v13 = vmax.f32 %v1301_v32, %v1265_v12  ;;  %v1528_v32 = vmax.f32 %v1526_v63, %v2638_v24  ;;  %v1529_v12 = vmax.f32 %v2636_v8, %v2640_v29 }
 0x28e   : > { %v1448_v16 = vpop.f32.mrf.mxu0  ;;  %v1497_v60 = vpop.f32.mrf.mxu1 }
 0x28f   : > { %v1519_v9 = vmax.f32 %v1517_v59, %v1448_v16  ;;  %v1530_v16 = vmax.f32 %v1528_v32, %v2642_v34 }
 0x293   : > { %v1218_v43 = vpop.f32.mrf.mxu2  ;;  %v1267_v44 = vpop.f32.mrf.mxu3 }
 0x294   : > { %v1289_v53 = vmax.f32 %v1287_v7, %v1218_v43  ;;  %v1304_v56 = vmax.f32 %v1302_v27, %v1267_v44 }
 0x296   : > { %v1451_v45 = vpop.f32.mrf.mxu0  ;;  %v1500_v14 = vpop.f32.mrf.mxu1 }
 0x297   : > { %v1520_v3 = vmax.f32 %v1518_v36, %v1451_v45  ;;  %v1531_v45 = vmax.f32 %v1529_v12, %v1490_v42 }
 0x29b   : > { %v1221_v47 = vpop.f32.mrf.mxu2  ;;  %v1270_v48 = vpop.f32.mrf.mxu3 }
 0x29c   : > { %v1290_v17 = vmax.f32 %v1288_v4, %v1221_v47  ;;  %v1305_v19 = vmax.f32 %v1303_v13, %v1270_v48  ;;  %v1532_v47 = vmax.f32 %v1530_v16, %v1492_v35 }
 0x29e   : > { %v1453_v49 = vpop.f32.mrf.mxu0  ;;  %v1534_v40 = vmax.f32 %v1532_v47, %v1497_v60 }
 0x29f   : > { %v1521_v5 = vmax.f32 %v1519_v9, %v1453_v49 }
 0x2a3   : > { %v1223_v51 = vpop.f32.mrf.mxu2  ;;  %v1272_v52 = vpop.f32.mrf.mxu3 }
 0x2a4   : > { %v1291_v20 = vmax.f32 %v1289_v53, %v1223_v51  ;;  %v1306_v21 = vmax.f32 %v1304_v56, %v1272_v52  ;;  %v1502_v51 = vpop.f32.mrf.mxu1 }
 0x2a5   : > { %v1536_v57 = vmax.f32 %v1534_v40, %v1502_v51 }
 0x2a6   : > { %v1456_v54 = vpop.f32.mrf.mxu0 }
 0x2a7   : > { %v1522_v46 = vmax.f32 %v1520_v3, %v1456_v54  ;;  %v1533_v54 = vmax.f32 %v1531_v45, %v1495_v50 }
 0x2a9   : > { %v1535_v24 = vmax.f32 %v1533_v54, %v1500_v14 }
 0x2ab   : > { %v1226_v0 = vpop.f32.mrf.mxu2  ;;  %v1275_v1 = vpop.f32.mrf.mxu3 }
 0x2ac   : > { %v1292_v18 = vmax.f32 %v1290_v17, %v1226_v0  ;;  %v1307_v62 = vmax.f32 %v1305_v19, %v1275_v1 }
 0x2ae   : > { %v1458_v10 = vpop.f32.mrf.mxu0 }
 0x2af   : > { %v1523_v11 = vmax.f32 %v1521_v5, %v1458_v10 }
 0x2b1   : > { %v1524_v15 = vmax.f32 %v1522_v46, %v1523_v11 }
 0x2b3   : > { %v1228_v23 = vpop.f32.mrf.mxu2  ;;  %v1277_v25 = vpop.f32.mrf.mxu3  ;;  %v1591_v39 = vrot.slane %v1524_v15, 4 }
 0x2b4   : > { %v1293_v26 = vmax.f32 %v1291_v20, %v1228_v23  ;;  %v1308_v22 = vmax.f32 %v1306_v21, %v1277_v25 }
 0x2b5   : > { %v1592_v52 = vmax.f32 %v1524_v15, %v1591_v39 }
 0x2b6   : > { %v1294_v28 = vmax.f32 %v1292_v18, %v1293_v26  ;;  %v1309_v30 = vmax.f32 %v1307_v62, %v1308_v22 }
 0x2b7   : > { %v1593_v8 = vrot.slane %v1592_v52, 2 }
 0x2b8   : > { %v1579_v31 = vrot.slane %v1294_v28, 4  ;;  %v1585_v33 = vrot.slane %v1309_v30, 4 }
 0x2b9   : > { %v1594_v1 = vmax.f32 %v1592_v52, %v1593_v8 }
 0x2ba   : > { %v1580_v37 = vmax.f32 %v1294_v28, %v1579_v31  ;;  %v1586_v38 = vmax.f32 %v1309_v30, %v1585_v33 }
 0x2bb   : > { %v1505_v41 = vpop.f32.mrf.mxu3  ;;  %v1595_v2 = vrot.slane %v1594_v1, 1 }
 0x2bc   : > { %v1581_v43 = vrot.slane %v1580_v37, 2  ;;  %v1587_v44 = vrot.slane %v1586_v38, 2  ;;  %v1537_v35 = vmax.f32 %v1535_v24, %v1505_v41 }
 0x2bd   : > { %v1596_v6 = vmax.f32 %v1594_v1, %v1595_v2 }
 0x2be   : > { %v1582_v48 = vmax.f32 %v1580_v37, %v1581_v43  ;;  %v1588_v49 = vmax.f32 %v1586_v38, %v1587_v44 }
 0x2bf   : > { %v1616_v10 = vrot.slane %v1596_v6, 2 }
 0x2c0   : > { %v1583_v61 = vrot.slane %v1582_v48, 1  ;;  %v1589_v63 = vrot.slane %v1588_v49, 1 }
 0x2c2   : > { %v1584_v58 = vmax.f32 %v1582_v48, %v1583_v61  ;;  %v1590_v59 = vmax.f32 %v1588_v49, %v1589_v63 }
 0x2c3   : > { %v1507_v29 = vpop.f32.mrf.mxu3 }
 0x2c4   : > { %v1614_v34 = vrot.slane %v1584_v58, 4  ;;  %v1615_v42 = vrot.slane %v1590_v59, 3  ;;  %v1538_v36 = vmax.f32 %v1536_v57, %v1507_v29 }
 0x2c6   : > { %v1539_v9 = vmax.f32 %v1537_v35, %v1538_v36  ;;  %v1623_v0 = vsel %vm1622_vm5, %v1614_v34, %v1615_v42 }
 0x2c8   : > { %v1597_v50 = vrot.slane %v1539_v9, 4 }
 0x2ca   : > { %v1598_v60 = vmax.f32 %v1539_v9, %v1597_v50 }
 0x2cc   : > { %v1599_v3 = vrot.slane %v1598_v60, 2 }
 0x2ce   : > { %v1600_v5 = vmax.f32 %v1598_v60, %v1599_v3 }
 0x2d0   : > { %v1601_v7 = vrot.slane %v1600_v5, 1 }
 0x2d2   : > { %v1602_v27 = vmax.f32 %v1600_v5, %v1601_v7 }
 0x2d4   : > { %v1617_v46 = vrot.slane %v1602_v27, 1 }
 0x2d6   : > { %v1625_v11 = vsel %vm1624_vm6, %v1616_v10, %v1617_v46 }
 0x2d7   : > { %v1627_v4 = vsel %vm1626_vm7, %v1623_v0, %v1625_v11 }
 0x2d8   : > { %v1629_v13 = vsel %vm1628_vm8, %v2630_v55, %v1627_v4 }
 0x2d9   : > { %1631 = vst [vmem:[%s298_s15] sm:$0xff] %v1629_v13 }
 0x2da   : > { %2292 = shalt.err (!%p2289_p9)
}
 0x2db   : > { %2168 = dma.vmem_to_hbm [thread:$0]  (%p2428_p4), %s1648_s16, 128, %s1650_s17, %s1633_s24  }
 0x2dc PF: > { %p2180_p10 = scmp.ge.s32.totalorder %s2347_s26, 2  ;;  %s1661_s30 = sand.u32 1, %s2327_s21  }
 0x2dd   : > { %s1662_s12 = scalar_lea.sflag [#allocation5], %s1661_s30 }
 0x2de   : > { %p2175_p11 = pnand %p2180_p10, %p2435_p8 }
 0x2e0   : > { %p2176_p12 = pneg %p2175_p11 }
 0x2e2   : > { %2322 = dma.done.wait (%p2176_p12), %s1662_s12, 128  }
 0x2e3   : > { %2324 = vsyncadd (%p2176_p12), %s1662_s12, 4294967168  ;;  %s20_s26 = sadd.s32 1, %s2347_s26   ;;  %s2698_s21 = smov %s2331_s22 }
 0x2e4   : > { %p17_p13 = scmp.ge.s32.totalorder %s20_s26, 4   ;;  %s2699_s22 = smov %s2335_s23 }
 0x2e5   : > { %s2700_s23 = smov %s2441_s10  ;;  %s2701_s24 = smov %s2343_s25 }
 0x2e6   : > { %s2702_s25 = smov %s2704_s29  ;;  %19 = sbr.rel (!%p17_p13) target bundleno = 5 (0x5), region = 92 }
 0x2eb   :  { %1668 = vsyncpa [#allocation4], 1 }
 0x2ec   :  { %1670 = vsyncpa [#allocation4 + $0x1], 1 }
 0x2ed   :  { %1671 = vsyncpa [#allocation5], 1 }
 0x2ee   :  { %1673 = vsyncpa [#allocation5 + $0x1], 1 }

</bundles_post_ra>
